<compile_context>
chip_gen: v7x
topology: tpu7x:2x2x1
jax: 0.10.0
libtpu: 0.0.40
codegen_flags: <defaults>
</compile_context>

<pallas_src>
import math

import jax
import jax.numpy as jnp
from jax import lax
from jax.experimental import pallas as pl
from jax.experimental.pallas import tpu as pltpu


def _mhsa_kernel(x_ref, wq_ref, bq_ref, wkv_ref, bkv_ref, wo_ref, bo_ref,
                 out_ref, k_cache, v_cache):
    """One grid step = (batch element, query block).

    x_ref   : (1, S, Din)     full-sequence x for this batch element (resident per b)
    wq_ref  : (Din, H*Dh)     fused per-head query weights (compute dtype)
    bq_ref  : (1, H*Dh)       f32
    wkv_ref : (Din, 2*H*Dh)   fused per-head key|value weights (compute dtype)
    bkv_ref : (1, 2*H*Dh)     f32
    wo_ref  : (H*Dh, Din)     output projection (compute dtype)
    bo_ref  : (1, Din)        f32
    out_ref : (1, TQ, Din)
    k_cache / v_cache : (H, S, Dh) VMEM scratch, compute dtype, persists across qi
    """
    num_heads, seq_len, head_dim = k_cache.shape
    hdh = num_heads * head_dim
    tq = out_ref.shape[1]
    cdt = k_cache.dtype                                 # matmul operand dtype
    scale = 1.0 / math.sqrt(float(head_dim))            # query.size(-1) ** 0.5
    qi = pl.program_id(1)

    # ---- K/V projection: once per batch element, cached head-major in VMEM.
    @pl.when(qi == 0)
    def _fill_kv_cache():
        xf = x_ref[0].astype(cdt)                                       # (S, Din)
        kv = jnp.dot(xf, wkv_ref[...], preferred_element_type=jnp.float32)
        kv = (kv + bkv_ref[...].astype(jnp.float32)).astype(cdt)        # (S, 2*H*Dh)
        # Lane relayout into per-head slabs happens once per batch element,
        # amortized over all NQ query blocks.
        for h in range(num_heads):
            k_cache[h] = kv[:, h * head_dim:(h + 1) * head_dim]
            v_cache[h] = kv[:, hdh + h * head_dim: hdh + (h + 1) * head_dim]

    # ---- Q projection for this query block (sliced from the resident x slab).
    q_start = pl.multiple_of(qi * tq, tq)
    xq = x_ref[0, pl.ds(q_start, tq), :].astype(cdt)                    # (TQ, Din)
    q = jnp.dot(xq, wq_ref[...], preferred_element_type=jnp.float32)
    q = (q + bq_ref[...].astype(jnp.float32)) * scale    # fold 1/sqrt(Dh) into q
    q = q.astype(cdt)                                                   # (TQ, H*Dh)

    # ---- Per-head attention; contexts concatenated, single fused out-proj.
    # TODO(synk): for num_heads > ~8 move heads to a fori_loop / grid axis to
    # bound live ranges (static Python unrolling keeps all temporaries live).
    approx_recip = jnp.dtype(cdt) == jnp.dtype(jnp.bfloat16)
    ctxs = []
    for h in range(num_heads):
        q_h = q[:, h * head_dim:(h + 1) * head_dim]                     # (TQ, Dh)
        k_h = k_cache[h]                                                # (S, Dh)
        v_h = v_cache[h]                                                # (S, Dh)

        # scores (TQ, S): contract over Dh; softmax stats kept in f32.
        s = lax.dot_general(q_h, k_h, (((1,), (1,)), ((), ())),
                            preferred_element_type=jnp.float32)
        m = jnp.max(s, axis=-1, keepdims=True)
        e = jnp.exp(s - m)
        l = jnp.sum(e, axis=-1, keepdims=True)

        ctx = jnp.dot(e.astype(cdt), v_h,
                      preferred_element_type=jnp.float32)               # (TQ, Dh)
        ctx = ctx * pl.reciprocal(l, approx=approx_recip)
        ctxs.append(ctx.astype(cdt))

    ctx_all = jnp.concatenate(ctxs, axis=-1)                            # (TQ, H*Dh)
    out = jnp.dot(ctx_all, wo_ref[...], preferred_element_type=jnp.float32)
    out_ref[0] = (out + bo_ref[...].astype(jnp.float32)).astype(out_ref.dtype)


def _pick_q_block(seq_len, requested):
    if requested is not None and seq_len % requested == 0:
        return requested
    # Prefer 256: fills the 256-wide MXU M dim on v6e/v7x and halves grid
    # steps.  Pass q_block=128 on v5e (its 128x128 MXU saturates there).
    for cand in (256, 128, 64, 32, 16, 8):
        if seq_len % cand == 0:
            return cand
    return seq_len


def fuse_params(params, compute_dtype=jnp.bfloat16):
    """One-time layout/fusion of per-head parameters (do this at load time).

    Weights are stored in `compute_dtype` (bf16 by default -> MXU peak rate);
    biases stay f32 since they are added to f32 accumulators in-kernel.
    """
    wq, bq, wk, bk, wv, bv, wo, bo = params
    H, Din, Dh = wq.shape
    HDh = H * Dh
    hm = lambda w: jnp.transpose(w, (1, 0, 2)).reshape(Din, HDh)  # head-major lanes
    wq_f = hm(wq).astype(compute_dtype)
    wkv_f = jnp.concatenate([hm(wk), hm(wv)], axis=1).astype(compute_dtype)
    bq_f = bq.reshape(1, HDh).astype(jnp.float32)
    bkv_f = jnp.concatenate([bk.reshape(1, HDh), bv.reshape(1, HDh)],
                            axis=1).astype(jnp.float32)
    wo_f = wo.reshape(HDh, Din).astype(compute_dtype)
    bo_f = bo.reshape(1, Din).astype(jnp.float32)
    return dict(wq=wq_f, bq=bq_f, wkv=wkv_f, bkv=bkv_f, wo=wo_f, bo=bo_f,
                num_heads=H, head_dim=Dh, compute_dtype=compute_dtype)


def multi_head_self_attention(x, fused, *, q_block=None):
    """x: (B, S, Din) -> (B, S, Din). `fused` as produced by fuse_params."""
    B, S, Din = x.shape
    H, Dh = fused["num_heads"], fused["head_dim"]
    HDh = H * Dh
    cdt = fused["compute_dtype"]
    TQ = _pick_q_block(S, q_block)
    NQ = S // TQ

    def resident(shape):
        zeros = (0,) * len(shape)
        return pl.BlockSpec(shape, lambda b, qi: zeros)   # block index never changes

    nbytes = lambda a: a.size * a.dtype.itemsize
    flops = (2 * B * S * Din * HDh                 # Q projection
             + 2 * B * S * Din * 2 * HDh           # K/V projection (once per b)
             + 2 * B * H * S * S * Dh * 2          # Q.K^T and P.V
             + 2 * B * S * HDh * Din)              # output projection
    cost = pl.CostEstimate(
        flops=flops,
        transcendentals=B * H * S * S,             # exp in softmax
        bytes_accessed=(nbytes(x)
                        + nbytes(fused["wq"]) + nbytes(fused["bq"])
                        + nbytes(fused["wkv"]) + nbytes(fused["bkv"])
                        + nbytes(fused["wo"]) + nbytes(fused["bo"])
                        + B * S * Din * x.dtype.itemsize))   # output write

    return pl.pallas_call(
        _mhsa_kernel,
        out_shape=jax.ShapeDtypeStruct((B, S, Din), x.dtype),
        grid_spec=pltpu.PrefetchScalarGridSpec(
            num_scalar_prefetch=0,
            grid=(B, NQ),
            in_specs=[
                pl.BlockSpec((1, S, Din), lambda b, qi: (b, 0, 0)),  # x, resident per b
                resident((Din, HDh)),          # Wq fused
                resident((1, HDh)),            # bq fused
                resident((Din, 2 * HDh)),      # Wk|Wv fused
                resident((1, 2 * HDh)),        # bk|bv fused
                resident((HDh, Din)),          # Wo (single 2-D slab)
                resident((1, Din)),            # bo
            ],
            out_specs=pl.BlockSpec((1, TQ, Din), lambda b, qi: (b, qi, 0)),
            scratch_shapes=[
                pltpu.VMEM((H, S, Dh), cdt),   # K cache (head-major, per batch elt)
                pltpu.VMEM((H, S, Dh), cdt),   # V cache
            ]),
        compiler_params=pltpu.CompilerParams(
            # qi must run sequentially within a batch element (KV-cache reuse);
            # B stays "parallel" so v7x's two TensorCores both get work (B >= 2).
            dimension_semantics=("parallel", "arbitrary")),
        cost_estimate=cost,
    )(x, fused["wq"], fused["bq"], fused["wkv"], fused["bkv"],
      fused["wo"], fused["bo"])


def init_params(key, input_dim, output_dim, num_heads, dtype=jnp.float32):
    """Mirror nn.Linear default init (uniform +-1/sqrt(fan_in)).

    Per-head weights stored transposed: (H, Din, Dh); biases (H, Dh).
    Output projection: (H*Dh, Din); bias (Din,).
    """
    ks = jax.random.split(key, 8)
    lim_h = 1.0 / math.sqrt(input_dim)
    lim_o = 1.0 / math.sqrt(num_heads * output_dim)
    u = lambda k, shape, lim: jax.random.uniform(k, shape, dtype, -lim, lim)

    wq = u(ks[0], (num_heads, input_dim, output_dim), lim_h)
    bq = u(ks[1], (num_heads, output_dim), lim_h)
    wk = u(ks[2], (num_heads, input_dim, output_dim), lim_h)
    bk = u(ks[3], (num_heads, output_dim), lim_h)
    wv = u(ks[4], (num_heads, input_dim, output_dim), lim_h)
    bv = u(ks[5], (num_heads, output_dim), lim_h)
    wo = u(ks[6], (num_heads * output_dim, input_dim), lim_o)
    bo = u(ks[7], (input_dim,), lim_o)
    return wq, bq, wk, bk, wv, bv, wo, bo


def _reference(x, params):
    """Pure-JAX reference matching the PyTorch forward."""
    wq, bq, wk, bk, wv, bv, wo, bo = params
    H, _, Dh = wq.shape
    outs = []
    for h in range(H):
        q = x @ wq[h] + bq[h]
        k = x @ wk[h] + bk[h]
        v = x @ wv[h] + bv[h]
        s = (q @ jnp.swapaxes(k, -2, -1)) / math.sqrt(Dh)
        p = jax.nn.softmax(s, axis=-1)
        outs.append(p @ v)
    cat = jnp.concatenate(outs, axis=-1)
    return cat @ wo + bo


if __name__ == "__main__":
    # Small but lane-friendly demo shapes: Din and H*Dh are 128-lane dense.
    batch, seq, input_dim, output_dim, num_heads = 2, 32, 128, 32, 4

    key = jax.random.PRNGKey(0)
    kx, kp = jax.random.split(key)
    x = jax.random.normal(kx, (batch, seq, input_dim), jnp.float32)
    params = init_params(kp, input_dim, output_dim, num_heads)
    ref = _reference(x, params)

    # Default path: bf16 matmul operands (MXU peak rate), f32 stats/accumulators.
    fused_bf16 = fuse_params(params, compute_dtype=jnp.bfloat16)
    out = jax.block_until_ready(
        multi_head_self_attention(x, fused_bf16, q_block=16))  # 2 q-blocks / batch
    assert out.shape == (batch, seq, input_dim)
    err = float(jnp.max(jnp.abs(out - ref)))
    assert jnp.allclose(out, ref, atol=3e-2, rtol=3e-2), f"bf16 max |err| = {err}"

    # f32 compute path (exact reciprocal), tight tolerance against reference.
    fused_f32 = fuse_params(params, compute_dtype=jnp.float32)
    out32 = jax.block_until_ready(
        multi_head_self_attention(x, fused_f32, q_block=16))
    err32 = float(jnp.max(jnp.abs(out32 - ref)))
    assert jnp.allclose(out32, ref, atol=5e-3, rtol=5e-3), f"f32 max |err| = {err32}"

    print("KERNEL_OK")
</pallas_src>

<mosaic_0001>
module attributes {stable_mosaic.version = 11 : i64} {
  func.func @_mhsa_kernel(%arg0: i32, %arg1: i32, %arg2: memref<1x32x128xf32, #tpu.memory_space<vmem>>, %arg3: memref<128x128xbf16, #tpu.memory_space<vmem>>, %arg4: memref<1x128xf32, #tpu.memory_space<vmem>>, %arg5: memref<128x256xbf16, #tpu.memory_space<vmem>>, %arg6: memref<1x256xf32, #tpu.memory_space<vmem>>, %arg7: memref<128x128xbf16, #tpu.memory_space<vmem>>, %arg8: memref<1x128xf32, #tpu.memory_space<vmem>>, %arg9: memref<1x16x128xf32, #tpu.memory_space<vmem>>, %arg10: memref<4x32x32xbf16, #tpu.memory_space<vmem>>, %arg11: memref<4x32x32xbf16, #tpu.memory_space<vmem>>) attributes {dimension_semantics = [#tpu.dimension_semantics<parallel>, #tpu.dimension_semantics<arbitrary>], iteration_bounds = array<i64: 2, 2>, scalar_prefetch = 0 : i64, scratch_operands = 2 : i64, tpu.core_type = #tpu.core_type<tc>, window_params = [{transform_indices = @transform_0, window_bounds = array<i64: 1, 32, 128>}, {pipeline_mode = #tpu.pipeline_mode<synchronous>, transform_indices = @transform_1, window_bounds = array<i64: 128, 128>}, {pipeline_mode = #tpu.pipeline_mode<synchronous>, transform_indices = @transform_2, window_bounds = array<i64: 1, 128>}, {pipeline_mode = #tpu.pipeline_mode<synchronous>, transform_indices = @transform_3, window_bounds = array<i64: 128, 256>}, {pipeline_mode = #tpu.pipeline_mode<synchronous>, transform_indices = @transform_4, window_bounds = array<i64: 1, 256>}, {pipeline_mode = #tpu.pipeline_mode<synchronous>, transform_indices = @transform_5, window_bounds = array<i64: 128, 128>}, {pipeline_mode = #tpu.pipeline_mode<synchronous>, transform_indices = @transform_6, window_bounds = array<i64: 1, 128>}, {transform_indices = @transform_7, window_bounds = array<i64: 1, 16, 128>}]} {
    %c0_i32 = arith.constant 0 : i32
    %0 = arith.cmpi eq, %arg1, %c0_i32 : i32
    %1 = arith.extui %0 : i1 to i32
    %c0_i32_0 = arith.constant 0 : i32
    %2 = arith.cmpi ne, %1, %c0_i32_0 : i32
    scf.if %2 {
      %c0_52 = arith.constant 0 : index
      %c0_53 = arith.constant 0 : index
      %c0_54 = arith.constant 0 : index
      %102 = vector.load %arg2[%c0_52, %c0_53, %c0_54] : memref<1x32x128xf32, #tpu.memory_space<vmem>>, vector<1x32x128xf32>
      %103 = vector.shape_cast %102 : vector<1x32x128xf32> to vector<32x128xf32>
      %104 = arith.truncf %103 : vector<32x128xf32> to vector<32x128xbf16>
      %c0_55 = arith.constant 0 : index
      %c0_56 = arith.constant 0 : index
      %105 = vector.load %arg5[%c0_55, %c0_56] : memref<128x256xbf16, #tpu.memory_space<vmem>>, vector<128x256xbf16>
      %cst_57 = arith.constant dense<0.000000e+00> : vector<32x256xf32>
      %106 = tpu.matmul %104, %105, %cst_57 {dimension_numbers = #tpu.dot_dimension_numbers<[1], [0], [0], [1], [0, 0, 1, 1], [], []>} : vector<32x128xbf16>, vector<128x256xbf16>, vector<32x256xf32> -> vector<32x256xf32>
      %c0_58 = arith.constant 0 : index
      %c0_59 = arith.constant 0 : index
      %107 = vector.load %arg6[%c0_58, %c0_59] : memref<1x256xf32, #tpu.memory_space<vmem>>, vector<1x256xf32>
      %108 = vector.broadcast %107 : vector<1x256xf32> to vector<32x256xf32>
      %109 = arith.addf %106, %108 : vector<32x256xf32>
      %110 = arith.truncf %109 : vector<32x256xf32> to vector<32x256xbf16>
      %111 = vector.extract_strided_slice %110 {offsets = [0, 0], sizes = [32, 32], strides = [1, 1]} : vector<32x256xbf16> to vector<32x32xbf16>
      %c0_60 = arith.constant 0 : index
      %c0_61 = arith.constant 0 : index
      %c0_62 = arith.constant 0 : index
      %112 = vector.load %arg10[%c0_60, %c0_61, %c0_62] : memref<4x32x32xbf16, #tpu.memory_space<vmem>>, vector<1x32x32xbf16>
      %113 = vector.shape_cast %112 : vector<1x32x32xbf16> to vector<32x32xbf16>
      %114 = vector.shape_cast %111 : vector<32x32xbf16> to vector<1x32x32xbf16>
      tpu.vector_store %arg10[%c0_60, %c0_61, %c0_62], %114 {strides = array<i32>} : memref<4x32x32xbf16, #tpu.memory_space<vmem>>, vector<1x32x32xbf16>,
      %115 = vector.extract_strided_slice %110 {offsets = [0, 128], sizes = [32, 32], strides = [1, 1]} : vector<32x256xbf16> to vector<32x32xbf16>
      %c0_63 = arith.constant 0 : index
      %c0_64 = arith.constant 0 : index
      %c0_65 = arith.constant 0 : index
      %116 = vector.load %arg11[%c0_63, %c0_64, %c0_65] : memref<4x32x32xbf16, #tpu.memory_space<vmem>>, vector<1x32x32xbf16>
      %117 = vector.shape_cast %116 : vector<1x32x32xbf16> to vector<32x32xbf16>
      %118 = vector.shape_cast %115 : vector<32x32xbf16> to vector<1x32x32xbf16>
      tpu.vector_store %arg11[%c0_63, %c0_64, %c0_65], %118 {strides = array<i32>} : memref<4x32x32xbf16, #tpu.memory_space<vmem>>, vector<1x32x32xbf16>,
      %119 = vector.extract_strided_slice %110 {offsets = [0, 32], sizes = [32, 32], strides = [1, 1]} : vector<32x256xbf16> to vector<32x32xbf16>
      %c1_66 = arith.constant 1 : index
      %c0_67 = arith.constant 0 : index
      %c0_68 = arith.constant 0 : index
      %120 = vector.load %arg10[%c1_66, %c0_67, %c0_68] : memref<4x32x32xbf16, #tpu.memory_space<vmem>>, vector<1x32x32xbf16>
      %121 = vector.shape_cast %120 : vector<1x32x32xbf16> to vector<32x32xbf16>
      %122 = vector.shape_cast %119 : vector<32x32xbf16> to vector<1x32x32xbf16>
      tpu.vector_store %arg10[%c1_66, %c0_67, %c0_68], %122 {strides = array<i32>} : memref<4x32x32xbf16, #tpu.memory_space<vmem>>, vector<1x32x32xbf16>,
      %123 = vector.extract_strided_slice %110 {offsets = [0, 160], sizes = [32, 32], strides = [1, 1]} : vector<32x256xbf16> to vector<32x32xbf16>
      %c1_69 = arith.constant 1 : index
      %c0_70 = arith.constant 0 : index
      %c0_71 = arith.constant 0 : index
      %124 = vector.load %arg11[%c1_69, %c0_70, %c0_71] : memref<4x32x32xbf16, #tpu.memory_space<vmem>>, vector<1x32x32xbf16>
      %125 = vector.shape_cast %124 : vector<1x32x32xbf16> to vector<32x32xbf16>
      %126 = vector.shape_cast %123 : vector<32x32xbf16> to vector<1x32x32xbf16>
      tpu.vector_store %arg11[%c1_69, %c0_70, %c0_71], %126 {strides = array<i32>} : memref<4x32x32xbf16, #tpu.memory_space<vmem>>, vector<1x32x32xbf16>,
      %127 = vector.extract_strided_slice %110 {offsets = [0, 64], sizes = [32, 32], strides = [1, 1]} : vector<32x256xbf16> to vector<32x32xbf16>
      %c2_72 = arith.constant 2 : index
      %c0_73 = arith.constant 0 : index
      %c0_74 = arith.constant 0 : index
      %128 = vector.load %arg10[%c2_72, %c0_73, %c0_74] : memref<4x32x32xbf16, #tpu.memory_space<vmem>>, vector<1x32x32xbf16>
      %129 = vector.shape_cast %128 : vector<1x32x32xbf16> to vector<32x32xbf16>
      %130 = vector.shape_cast %127 : vector<32x32xbf16> to vector<1x32x32xbf16>
      tpu.vector_store %arg10[%c2_72, %c0_73, %c0_74], %130 {strides = array<i32>} : memref<4x32x32xbf16, #tpu.memory_space<vmem>>, vector<1x32x32xbf16>,
      %131 = vector.extract_strided_slice %110 {offsets = [0, 192], sizes = [32, 32], strides = [1, 1]} : vector<32x256xbf16> to vector<32x32xbf16>
      %c2_75 = arith.constant 2 : index
      %c0_76 = arith.constant 0 : index
      %c0_77 = arith.constant 0 : index
      %132 = vector.load %arg11[%c2_75, %c0_76, %c0_77] : memref<4x32x32xbf16, #tpu.memory_space<vmem>>, vector<1x32x32xbf16>
      %133 = vector.shape_cast %132 : vector<1x32x32xbf16> to vector<32x32xbf16>
      %134 = vector.shape_cast %131 : vector<32x32xbf16> to vector<1x32x32xbf16>
      tpu.vector_store %arg11[%c2_75, %c0_76, %c0_77], %134 {strides = array<i32>} : memref<4x32x32xbf16, #tpu.memory_space<vmem>>, vector<1x32x32xbf16>,
      %135 = vector.extract_strided_slice %110 {offsets = [0, 96], sizes = [32, 32], strides = [1, 1]} : vector<32x256xbf16> to vector<32x32xbf16>
      %c3_78 = arith.constant 3 : index
      %c0_79 = arith.constant 0 : index
      %c0_80 = arith.constant 0 : index
      %136 = vector.load %arg10[%c3_78, %c0_79, %c0_80] : memref<4x32x32xbf16, #tpu.memory_space<vmem>>, vector<1x32x32xbf16>
      %137 = vector.shape_cast %136 : vector<1x32x32xbf16> to vector<32x32xbf16>
      %138 = vector.shape_cast %135 : vector<32x32xbf16> to vector<1x32x32xbf16>
      tpu.vector_store %arg10[%c3_78, %c0_79, %c0_80], %138 {strides = array<i32>} : memref<4x32x32xbf16, #tpu.memory_space<vmem>>, vector<1x32x32xbf16>,
      %139 = vector.extract_strided_slice %110 {offsets = [0, 224], sizes = [32, 32], strides = [1, 1]} : vector<32x256xbf16> to vector<32x32xbf16>
      %c3_81 = arith.constant 3 : index
      %c0_82 = arith.constant 0 : index
      %c0_83 = arith.constant 0 : index
      %140 = vector.load %arg11[%c3_81, %c0_82, %c0_83] : memref<4x32x32xbf16, #tpu.memory_space<vmem>>, vector<1x32x32xbf16>
      %141 = vector.shape_cast %140 : vector<1x32x32xbf16> to vector<32x32xbf16>
      %142 = vector.shape_cast %139 : vector<32x32xbf16> to vector<1x32x32xbf16>
      tpu.vector_store %arg11[%c3_81, %c0_82, %c0_83], %142 {strides = array<i32>} : memref<4x32x32xbf16, #tpu.memory_space<vmem>>, vector<1x32x32xbf16>,
    } else {
    }
    %c16_i32 = arith.constant 16 : i32
    %3 = arith.muli %arg1, %c16_i32 : i32
    %4 = tpu.assume_multiple %3, 16 : i32
    %c0 = arith.constant 0 : index
    %5 = arith.index_cast %4 : i32 to index
    %c0_1 = arith.constant 0 : index
    %6 = vector.load %arg2[%c0, %5, %c0_1] : memref<1x32x128xf32, #tpu.memory_space<vmem>>, vector<1x16x128xf32>
    %7 = vector.shape_cast %6 : vector<1x16x128xf32> to vector<16x128xf32>
    %8 = arith.truncf %7 : vector<16x128xf32> to vector<16x128xbf16>
    %c0_2 = arith.constant 0 : index
    %c0_3 = arith.constant 0 : index
    %9 = vector.load %arg3[%c0_2, %c0_3] : memref<128x128xbf16, #tpu.memory_space<vmem>>, vector<128x128xbf16>
    %cst = arith.constant dense<0.000000e+00> : vector<16x128xf32>
    %10 = tpu.matmul %8, %9, %cst {dimension_numbers = #tpu.dot_dimension_numbers<[1], [0], [0], [1], [0, 0, 1, 1], [], []>} : vector<16x128xbf16>, vector<128x128xbf16>, vector<16x128xf32> -> vector<16x128xf32>
    %c0_4 = arith.constant 0 : index
    %c0_5 = arith.constant 0 : index
    %11 = vector.load %arg4[%c0_4, %c0_5] : memref<1x128xf32, #tpu.memory_space<vmem>>, vector<1x128xf32>
    %12 = vector.broadcast %11 : vector<1x128xf32> to vector<16x128xf32>
    %13 = arith.addf %10, %12 : vector<16x128xf32>
    %cst_6 = arith.constant 0.176776692 : f32
    %14 = vector.broadcast %cst_6 : f32 to vector<16x128xf32>
    %15 = arith.mulf %13, %14 : vector<16x128xf32>
    %16 = arith.truncf %15 : vector<16x128xf32> to vector<16x128xbf16>
    %17 = vector.extract_strided_slice %16 {offsets = [0, 0], sizes = [16, 32], strides = [1, 1]} : vector<16x128xbf16> to vector<16x32xbf16>
    %c0_7 = arith.constant 0 : index
    %c0_8 = arith.constant 0 : index
    %c0_9 = arith.constant 0 : index
    %18 = vector.load %arg10[%c0_7, %c0_8, %c0_9] : memref<4x32x32xbf16, #tpu.memory_space<vmem>>, vector<1x32x32xbf16>
    %19 = vector.shape_cast %18 : vector<1x32x32xbf16> to vector<32x32xbf16>
    %c0_10 = arith.constant 0 : index
    %c0_11 = arith.constant 0 : index
    %c0_12 = arith.constant 0 : index
    %20 = vector.load %arg11[%c0_10, %c0_11, %c0_12] : memref<4x32x32xbf16, #tpu.memory_space<vmem>>, vector<1x32x32xbf16>
    %21 = vector.shape_cast %20 : vector<1x32x32xbf16> to vector<32x32xbf16>
    %cst_13 = arith.constant dense<0.000000e+00> : vector<16x32xf32>
    %22 = tpu.matmul %17, %19, %cst_13 {dimension_numbers = #tpu.dot_dimension_numbers<[1], [1], [0], [0], [0, 0, 1, 0], [], []>} : vector<16x32xbf16>, vector<32x32xbf16>, vector<16x32xf32> -> vector<16x32xf32>
    %cst_14 = arith.constant dense<0xFF800000> : vector<16xf32>
    %23 = vector.multi_reduction <maximumf>, %22, %cst_14 [1] : vector<16x32xf32> to vector<16xf32>
    %24 = vector.shape_cast %23 : vector<16xf32> to vector<16x1xf32>
    %25 = vector.broadcast %24 : vector<16x1xf32> to vector<16x32xf32>
    %26 = arith.subf %22, %25 : vector<16x32xf32>
    %27 = math.exp %26 : vector<16x32xf32>
    %cst_15 = arith.constant dense<0.000000e+00> : vector<16xf32>
    %28 = vector.multi_reduction <add>, %27, %cst_15 [1] : vector<16x32xf32> to vector<16xf32>
    %29 = vector.shape_cast %28 : vector<16xf32> to vector<16x1xf32>
    %30 = arith.truncf %27 : vector<16x32xf32> to vector<16x32xbf16>
    %cst_16 = arith.constant dense<0.000000e+00> : vector<16x32xf32>
    %31 = tpu.matmul %30, %21, %cst_16 {dimension_numbers = #tpu.dot_dimension_numbers<[1], [0], [0], [1], [0, 0, 1, 1], [], []>} : vector<16x32xbf16>, vector<32x32xbf16>, vector<16x32xf32> -> vector<16x32xf32>
    %32 = tpu.reciprocal %29 {approx = true} : vector<16x1xf32> -> vector<16x1xf32>
    %33 = vector.broadcast %32 : vector<16x1xf32> to vector<16x32xf32>
    %34 = arith.mulf %31, %33 : vector<16x32xf32>
    %35 = arith.truncf %34 : vector<16x32xf32> to vector<16x32xbf16>
    %36 = vector.extract_strided_slice %16 {offsets = [0, 32], sizes = [16, 32], strides = [1, 1]} : vector<16x128xbf16> to vector<16x32xbf16>
    %c1 = arith.constant 1 : index
    %c0_17 = arith.constant 0 : index
    %c0_18 = arith.constant 0 : index
    %37 = vector.load %arg10[%c1, %c0_17, %c0_18] : memref<4x32x32xbf16, #tpu.memory_space<vmem>>, vector<1x32x32xbf16>
    %38 = vector.shape_cast %37 : vector<1x32x32xbf16> to vector<32x32xbf16>
    %c1_19 = arith.constant 1 : index
    %c0_20 = arith.constant 0 : index
    %c0_21 = arith.constant 0 : index
    %39 = vector.load %arg11[%c1_19, %c0_20, %c0_21] : memref<4x32x32xbf16, #tpu.memory_space<vmem>>, vector<1x32x32xbf16>
    %40 = vector.shape_cast %39 : vector<1x32x32xbf16> to vector<32x32xbf16>
    %cst_22 = arith.constant dense<0.000000e+00> : vector<16x32xf32>
    %41 = tpu.matmul %36, %38, %cst_22 {dimension_numbers = #tpu.dot_dimension_numbers<[1], [1], [0], [0], [0, 0, 1, 0], [], []>} : vector<16x32xbf16>, vector<32x32xbf16>, vector<16x32xf32> -> vector<16x32xf32>
    %cst_23 = arith.constant dense<0xFF800000> : vector<16xf32>
    %42 = vector.multi_reduction <maximumf>, %41, %cst_23 [1] : vector<16x32xf32> to vector<16xf32>
    %43 = vector.shape_cast %42 : vector<16xf32> to vector<16x1xf32>
    %44 = vector.broadcast %43 : vector<16x1xf32> to vector<16x32xf32>
    %45 = arith.subf %41, %44 : vector<16x32xf32>
    %46 = math.exp %45 : vector<16x32xf32>
    %cst_24 = arith.constant dense<0.000000e+00> : vector<16xf32>
    %47 = vector.multi_reduction <add>, %46, %cst_24 [1] : vector<16x32xf32> to vector<16xf32>
    %48 = vector.shape_cast %47 : vector<16xf32> to vector<16x1xf32>
    %49 = arith.truncf %46 : vector<16x32xf32> to vector<16x32xbf16>
    %cst_25 = arith.constant dense<0.000000e+00> : vector<16x32xf32>
    %50 = tpu.matmul %49, %40, %cst_25 {dimension_numbers = #tpu.dot_dimension_numbers<[1], [0], [0], [1], [0, 0, 1, 1], [], []>} : vector<16x32xbf16>, vector<32x32xbf16>, vector<16x32xf32> -> vector<16x32xf32>
    %51 = tpu.reciprocal %48 {approx = true} : vector<16x1xf32> -> vector<16x1xf32>
    %52 = vector.broadcast %51 : vector<16x1xf32> to vector<16x32xf32>
    %53 = arith.mulf %50, %52 : vector<16x32xf32>
    %54 = arith.truncf %53 : vector<16x32xf32> to vector<16x32xbf16>
    %55 = vector.extract_strided_slice %16 {offsets = [0, 64], sizes = [16, 32], strides = [1, 1]} : vector<16x128xbf16> to vector<16x32xbf16>
    %c2 = arith.constant 2 : index
    %c0_26 = arith.constant 0 : index
    %c0_27 = arith.constant 0 : index
    %56 = vector.load %arg10[%c2, %c0_26, %c0_27] : memref<4x32x32xbf16, #tpu.memory_space<vmem>>, vector<1x32x32xbf16>
    %57 = vector.shape_cast %56 : vector<1x32x32xbf16> to vector<32x32xbf16>
    %c2_28 = arith.constant 2 : index
    %c0_29 = arith.constant 0 : index
    %c0_30 = arith.constant 0 : index
    %58 = vector.load %arg11[%c2_28, %c0_29, %c0_30] : memref<4x32x32xbf16, #tpu.memory_space<vmem>>, vector<1x32x32xbf16>
    %59 = vector.shape_cast %58 : vector<1x32x32xbf16> to vector<32x32xbf16>
    %cst_31 = arith.constant dense<0.000000e+00> : vector<16x32xf32>
    %60 = tpu.matmul %55, %57, %cst_31 {dimension_numbers = #tpu.dot_dimension_numbers<[1], [1], [0], [0], [0, 0, 1, 0], [], []>} : vector<16x32xbf16>, vector<32x32xbf16>, vector<16x32xf32> -> vector<16x32xf32>
    %cst_32 = arith.constant dense<0xFF800000> : vector<16xf32>
    %61 = vector.multi_reduction <maximumf>, %60, %cst_32 [1] : vector<16x32xf32> to vector<16xf32>
    %62 = vector.shape_cast %61 : vector<16xf32> to vector<16x1xf32>
    %63 = vector.broadcast %62 : vector<16x1xf32> to vector<16x32xf32>
    %64 = arith.subf %60, %63 : vector<16x32xf32>
    %65 = math.exp %64 : vector<16x32xf32>
    %cst_33 = arith.constant dense<0.000000e+00> : vector<16xf32>
    %66 = vector.multi_reduction <add>, %65, %cst_33 [1] : vector<16x32xf32> to vector<16xf32>
    %67 = vector.shape_cast %66 : vector<16xf32> to vector<16x1xf32>
    %68 = arith.truncf %65 : vector<16x32xf32> to vector<16x32xbf16>
    %cst_34 = arith.constant dense<0.000000e+00> : vector<16x32xf32>
    %69 = tpu.matmul %68, %59, %cst_34 {dimension_numbers = #tpu.dot_dimension_numbers<[1], [0], [0], [1], [0, 0, 1, 1], [], []>} : vector<16x32xbf16>, vector<32x32xbf16>, vector<16x32xf32> -> vector<16x32xf32>
    %70 = tpu.reciprocal %67 {approx = true} : vector<16x1xf32> -> vector<16x1xf32>
    %71 = vector.broadcast %70 : vector<16x1xf32> to vector<16x32xf32>
    %72 = arith.mulf %69, %71 : vector<16x32xf32>
    %73 = arith.truncf %72 : vector<16x32xf32> to vector<16x32xbf16>
    %74 = vector.extract_strided_slice %16 {offsets = [0, 96], sizes = [16, 32], strides = [1, 1]} : vector<16x128xbf16> to vector<16x32xbf16>
    %c3 = arith.constant 3 : index
    %c0_35 = arith.constant 0 : index
    %c0_36 = arith.constant 0 : index
    %75 = vector.load %arg10[%c3, %c0_35, %c0_36] : memref<4x32x32xbf16, #tpu.memory_space<vmem>>, vector<1x32x32xbf16>
    %76 = vector.shape_cast %75 : vector<1x32x32xbf16> to vector<32x32xbf16>
    %c3_37 = arith.constant 3 : index
    %c0_38 = arith.constant 0 : index
    %c0_39 = arith.constant 0 : index
    %77 = vector.load %arg11[%c3_37, %c0_38, %c0_39] : memref<4x32x32xbf16, #tpu.memory_space<vmem>>, vector<1x32x32xbf16>
    %78 = vector.shape_cast %77 : vector<1x32x32xbf16> to vector<32x32xbf16>
    %cst_40 = arith.constant dense<0.000000e+00> : vector<16x32xf32>
    %79 = tpu.matmul %74, %76, %cst_40 {dimension_numbers = #tpu.dot_dimension_numbers<[1], [1], [0], [0], [0, 0, 1, 0], [], []>} : vector<16x32xbf16>, vector<32x32xbf16>, vector<16x32xf32> -> vector<16x32xf32>
    %cst_41 = arith.constant dense<0xFF800000> : vector<16xf32>
    %80 = vector.multi_reduction <maximumf>, %79, %cst_41 [1] : vector<16x32xf32> to vector<16xf32>
    %81 = vector.shape_cast %80 : vector<16xf32> to vector<16x1xf32>
    %82 = vector.broadcast %81 : vector<16x1xf32> to vector<16x32xf32>
    %83 = arith.subf %79, %82 : vector<16x32xf32>
    %84 = math.exp %83 : vector<16x32xf32>
    %cst_42 = arith.constant dense<0.000000e+00> : vector<16xf32>
    %85 = vector.multi_reduction <add>, %84, %cst_42 [1] : vector<16x32xf32> to vector<16xf32>
    %86 = vector.shape_cast %85 : vector<16xf32> to vector<16x1xf32>
    %87 = arith.truncf %84 : vector<16x32xf32> to vector<16x32xbf16>
    %cst_43 = arith.constant dense<0.000000e+00> : vector<16x32xf32>
    %88 = tpu.matmul %87, %78, %cst_43 {dimension_numbers = #tpu.dot_dimension_numbers<[1], [0], [0], [1], [0, 0, 1, 1], [], []>} : vector<16x32xbf16>, vector<32x32xbf16>, vector<16x32xf32> -> vector<16x32xf32>
    %89 = tpu.reciprocal %86 {approx = true} : vector<16x1xf32> -> vector<16x1xf32>
    %90 = vector.broadcast %89 : vector<16x1xf32> to vector<16x32xf32>
    %91 = arith.mulf %88, %90 : vector<16x32xf32>
    %92 = arith.truncf %91 : vector<16x32xf32> to vector<16x32xbf16>
    %93 = tpu.concatenate %35, %54, %73, %92 in 1 : vector<16x32xbf16>, vector<16x32xbf16>, vector<16x32xbf16>, vector<16x32xbf16> -> vector<16x128xbf16>
    %c0_44 = arith.constant 0 : index
    %c0_45 = arith.constant 0 : index
    %94 = vector.load %arg7[%c0_44, %c0_45] : memref<128x128xbf16, #tpu.memory_space<vmem>>, vector<128x128xbf16>
    %cst_46 = arith.constant dense<0.000000e+00> : vector<16x128xf32>
    %95 = tpu.matmul %93, %94, %cst_46 {dimension_numbers = #tpu.dot_dimension_numbers<[1], [0], [0], [1], [0, 0, 1, 1], [], []>} : vector<16x128xbf16>, vector<128x128xbf16>, vector<16x128xf32> -> vector<16x128xf32>
    %c0_47 = arith.constant 0 : index
    %c0_48 = arith.constant 0 : index
    %96 = vector.load %arg8[%c0_47, %c0_48] : memref<1x128xf32, #tpu.memory_space<vmem>>, vector<1x128xf32>
    %97 = vector.broadcast %96 : vector<1x128xf32> to vector<16x128xf32>
    %98 = arith.addf %95, %97 : vector<16x128xf32>
    %c0_49 = arith.constant 0 : index
    %c0_50 = arith.constant 0 : index
    %c0_51 = arith.constant 0 : index
    %99 = vector.load %arg9[%c0_49, %c0_50, %c0_51] : memref<1x16x128xf32, #tpu.memory_space<vmem>>, vector<1x16x128xf32>
    %100 = vector.shape_cast %99 : vector<1x16x128xf32> to vector<16x128xf32>
    %101 = vector.shape_cast %98 : vector<16x128xf32> to vector<1x16x128xf32>
    tpu.vector_store %arg9[%c0_49, %c0_50, %c0_51], %101 {strides = array<i32>} : memref<1x16x128xf32, #tpu.memory_space<vmem>>, vector<1x16x128xf32>,
    return
  }
  func.func @transform_0(%arg0: i32, %arg1: i32) -> (i32, i32, i32) {
    %c0_i32 = arith.constant 0 : i32
    %c0_i32_0 = arith.constant 0 : i32
    %c0_i32_1 = arith.constant 0 : i32
    return %arg0, %c0_i32, %c0_i32_0 : i32, i32, i32
  }
  func.func @transform_1(%arg0: i32, %arg1: i32) -> (i32, i32) {
    %c0_i32 = arith.constant 0 : i32
    %c0_i32_0 = arith.constant 0 : i32
    %c0_i32_1 = arith.constant 0 : i32
    return %c0_i32, %c0_i32_0 : i32, i32
  }
  func.func @transform_2(%arg0: i32, %arg1: i32) -> (i32, i32) {
    %c0_i32 = arith.constant 0 : i32
    %c0_i32_0 = arith.constant 0 : i32
    %c0_i32_1 = arith.constant 0 : i32
    return %c0_i32, %c0_i32_0 : i32, i32
  }
  func.func @transform_3(%arg0: i32, %arg1: i32) -> (i32, i32) {
    %c0_i32 = arith.constant 0 : i32
    %c0_i32_0 = arith.constant 0 : i32
    %c0_i32_1 = arith.constant 0 : i32
    return %c0_i32, %c0_i32_0 : i32, i32
  }
  func.func @transform_4(%arg0: i32, %arg1: i32) -> (i32, i32) {
    %c0_i32 = arith.constant 0 : i32
    %c0_i32_0 = arith.constant 0 : i32
    %c0_i32_1 = arith.constant 0 : i32
    return %c0_i32, %c0_i32_0 : i32, i32
  }
  func.func @transform_5(%arg0: i32, %arg1: i32) -> (i32, i32) {
    %c0_i32 = arith.constant 0 : i32
    %c0_i32_0 = arith.constant 0 : i32
    %c0_i32_1 = arith.constant 0 : i32
    return %c0_i32, %c0_i32_0 : i32, i32
  }
  func.func @transform_6(%arg0: i32, %arg1: i32) -> (i32, i32) {
    %c0_i32 = arith.constant 0 : i32
    %c0_i32_0 = arith.constant 0 : i32
    %c0_i32_1 = arith.constant 0 : i32
    return %c0_i32, %c0_i32_0 : i32, i32
  }
  func.func @transform_7(%arg0: i32, %arg1: i32) -> (i32, i32, i32) {
    %c0_i32 = arith.constant 0 : i32
    %c0_i32_0 = arith.constant 0 : i32
    return %arg0, %arg1, %c0_i32 : i32, i32, i32
  }
}

</mosaic_0001>

<bundles_post_ra>
// kernel: tpu_custom_call.1
= control target key start
LH: loop header
LB: loop body
LE: loop exit
PB: predicated region body
PF: predicated region fallthrough
CT: control target
= control target key end

     0   :  { %s2727_s0 = inlined_call_operand.hbm [shape: f32[2,32,128], index: 0, kind: input, shape index: {}]   ;;  %s2728_s1 = inlined_call_operand.hbm [shape: bf16[128,128], index: 1, kind: input, shape index: {}]   ;;  %s2729_s2 = inlined_call_operand.vmem [shape: f32[1,128], index: 2, kind: input, shape index: {}]   ;;  %s2730_s3 = inlined_call_operand.hbm [shape: bf16[128,256], index: 3, kind: input, shape index: {}]   ;;  %s2731_s4 = inlined_call_operand.vmem [shape: f32[1,256], index: 4, kind: input, shape index: {}]   ;;  %s2732_s5 = inlined_call_operand.hbm [shape: bf16[128,128], index: 5, kind: input, shape index: {}]   ;;  %s2733_s6 = inlined_call_operand.vmem [shape: f32[1,128], index: 6, kind: input, shape index: {}]   ;;  %s2734_s7 = inlined_call_operand.hbm [shape: f32[2,32,128], index: 7, kind: output, shape index: {}]  }
   0x1   :  { %2749 = sst [smem:[#allocation21_spill]] %s2728_s1 }
   0x2   :  { %2750 = sst [smem:[#allocation22_spill]] %s2729_s2 }
   0x3   :  { %2751 = sst [smem:[#allocation23_spill]] %s2730_s3 }
   0x4   :  { %2752 = sst [smem:[#allocation24_spill]] %s2732_s5 }
   0x5   :  { %2753 = sst [smem:[#allocation25_spill]] %s2733_s6 }
   0x6   :  { %2754 = sst [smem:[#allocation26_spill]] %s2734_s7 }
   0x7   :  { %12 = vsyncpa [#allocation5], 0 }
   0x8   :  { %14 = vsyncpa [#allocation5 + $0x1], 0 }
   0x9   :  { %15 = vsyncpa [#allocation8], 0 }
   0xa   :  { %16 = vsyncpa [#allocation11], 0 }
   0xb   :  { %17 = vsyncpa [#allocation6], 0 }
   0xc   :  { %19 = vsyncpa [#allocation6 + $0x1], 0  ;;  %s2239_s24 = smov 0   ;;  %s2241_s25 = smov 0  }
   0xd   :  { %s2243_s26 = smov 0   ;;  %s2245_s27 = smov 0  }
   0xe   :  { %s2247_s28 = smov 0   ;;  %s2249_s29 = smov 0  }
   0xf   :  { %s2251_s30 = smov 0   ;;  %s2253_s8 = smov 0  }
  0x10   :  { %s2255_s9 = smov 0   ;;  %s2257_s10 = smov 0  }
  0x11   :  { %s2259_s11 = smov 0  }
  0x12 LB: > { %2755 = sst [smem:[#allocation17_spill]] %s2137_s24  ;;  %s1484_s12 = sadd.s32 4294967295, %s2177_s11   ;;  %s2177_s11 = sphi %s2259_s11, %s25_s11   ;;  %s2173_s10 = sphi %s2257_s10, %s2798_s10   ;;  %s2169_s9 = sphi %s2255_s9, %s2797_s9   ;;  %s2165_s8 = sphi %s2253_s8, %s2796_s8   ;;  %s2161_s30 = sphi %s2251_s30, %s2795_s30   ;;  %s2157_s29 = sphi %s2249_s29, %s2794_s29   ;;  %s2153_s28 = sphi %s2247_s28, %s2793_s28   ;;  %s2149_s27 = sphi %s2245_s27, %s2792_s27   ;;  %s2145_s26 = sphi %s2243_s26, %s2791_s26   ;;  %s2141_s25 = sphi %s2241_s25, %s2790_s25   ;;  %s2137_s24 = sphi %s2239_s24, %s2789_s24  }
  0x13   : > { %2756 = sst [smem:[#allocation18_spill]] %s2165_s8  ;;  %s1485_s13 = sadd.s32 4294967294, %s2177_s11  }
  0x14   : > { %p57_p0 = scmp.ne.s32.totalorder %s2153_s28, %s2149_s27  ;;  %p2295_p1 = scmp.eq.s32.totalorder %s1484_s12, 0 }
  0x15   : > { %p208_p2 = scmp.ne.s32.totalorder %s2145_s26, %s2141_s25  ;;  %p209_p4 = scmp.eq.s32.totalorder %s1484_s12, 3 }
  0x16   : > { %s2757_s14 = scalar_select %p2295_p1, 1, 0 }
  0x17   : > { %p2304_p3 = por %p2295_p1, %p57_p0  ;;  %p214_p5 = scmp.ne.s32.totalorder %s2141_s25, %s2137_s24 }
  0x18   : > { %p215_p6 = scmp.eq.s32.totalorder %s1485_s13, 3  ;;  %p2310_p7 = por %p209_p4, %p208_p2 }
  0x19   : > { %s2758_s16 = scalar_select %p2304_p3, 1, 0 }
  0x1a   : > { %s2759_s17 = scalar_select %p2310_p7, 1, 0 }
  0x1b   : > { %p1486_p8 = scmp.ge.s32.totalorder %s2177_s11, 1  ;;  %p2315_p9 = por %p215_p6, %p214_p5 }
  0x1c   : > { %2760 = sst [smem:[#allocation19_spill]] %s2759_s17  ;;  %p222_p10 = scmp.lt.s32.totalorder %s2177_s11, 5 }
  0x1d   : > { %s2761_s18 = scalar_select %p2315_p9, 1, 0 }
  0x1e   : > { %p2320_p11 = pnand %p1486_p8, %p222_p10  ;;  %s2179_s20 = smov [#allocation7]  }
  0x1f   : > { %2762 = sst [smem:[#allocation20_spill]] %s2761_s18  ;;  %s234_s21 = sshll.u32 %s2179_s20, 4  ;;  %s235_s21 = int_to_ptr.vmem [resolvable:$true] %s234_s21 }
  0x20   : > { %s2763_s19 = scalar_select %p2320_p11, 1, 0 }
  0x21   : > { %p1729_p12 = pneg %p2320_p11  ;;  %s2180_s23 = smov [#allocation9]  }
  0x22   : > { %s250_s27 = sshll.u32 %s2180_s23, 4  ;;  %s2765_s1 = sld [smem:[#allocation21_spill]]  ;;  %s2332_s27 = int_to_ptr.vmem [resolvable:$true] %s250_s27 }
  0x23   : > { %p2328_p13 = pnand %p1729_p12, %p2295_p1 }
  0x25   : > { %p2342_p2 = pneg %p2328_p13 }
  0x28   : > { %s1933_s15 = scalar_lea.hbm %s2765_s1, 1024 }
  0x29   : > { %p1934_p0 = scmp.ne.s32.totalorder %s2765_s1, %s1933_s15  ;;  %p1940_p6 = scmp.lt.u32.totalorder %s1933_s15, %s2765_s1 }
  0x2b   : > { %p1936_p4 = pnand %p2342_p2, %p1934_p0 }
  0x2d   : > { %p1937_p5 = pneg %p1936_p4 }
  0x2f   : > { %p1942_p8 = pnand %p1940_p6, %p1937_p5 }
  0x31   : > { %1945 = shalt.err (!%p1942_p8)
}
  0x32   : > { %s1946_s12 = scalar_lea.vmem %s235_s21, 1024  ;;  %p1954_p7 = scmp.lt.s32.totalorder %s235_s21, %s235_s21 }
  0x33   : > { %p1947_p10 = scmp.ne.s32.totalorder %s235_s21, %s1946_s12  ;;  %p1955_p1 = scmp.lt.s32.totalorder %s1946_s12, %s1946_s12 }
  0x35   : > { %p1949_p12 = pnand %p1947_p10, %p2342_p2  ;;  %p1956_p3 = por %p1955_p1, %p1954_p7 }
  0x37   : > { %p1950_p9 = pneg %p1949_p12 }
  0x39   : > { %p1957_p11 = pnand %p1956_p3, %p1950_p9 }
  0x3b   : > { %1960 = shalt.err (!%p1957_p11)
}
  0x3c   : > { %s2745_s24 = smov 64   ;;  %s2746_s18 = smov 4  }
  0x3d   : > { %1732 = dma.hbm_to_vmem [thread:$0]  (!%p2328_p13), %s2765_s1, 1024, %s235_s21, [#allocation8], %s2745_s24, %s2745_s24, %s2746_s18  }
  0x3e   : > { %s2767_s3 = sld [smem:[#allocation23_spill]] }
  0x44   : > { %s1961_s17 = scalar_lea.hbm %s2767_s3, 2048 }
  0x45   : > { %p1962_p1 = scmp.ne.s32.totalorder %s2767_s3, %s1961_s17  ;;  %p1968_p9 = scmp.lt.u32.totalorder %s1961_s17, %s2767_s3 }
  0x47   : > { %p1964_p3 = pnand %p1962_p1, %p2342_p2 }
  0x49   : > { %p1965_p7 = pneg %p1964_p3 }
  0x4b   : > { %p1970_p11 = pnand %p1968_p9, %p1965_p7 }
  0x4d   : > { %1973 = shalt.err (!%p1970_p11)
}
  0x4e   : > { %s1974_s21 = scalar_lea.vmem %s2332_s27, 2048  ;;  %p1982_p6 = scmp.lt.s32.totalorder %s2332_s27, %s2332_s27 }
  0x4f   : > { %p1975_p0 = scmp.ne.s32.totalorder %s2332_s27, %s1974_s21  ;;  %p1983_p8 = scmp.lt.s32.totalorder %s1974_s21, %s1974_s21 }
  0x51   : > { %p1977_p4 = pnand %p1975_p0, %p2342_p2  ;;  %p1984_p10 = por %p1983_p8, %p1982_p6 }
  0x53   : > { %p1978_p5 = pneg %p1977_p4 }
  0x55   : > { %p1985_p12 = pnand %p1984_p10, %p1978_p5 }
  0x57   : > { %1988 = shalt.err (!%p1985_p12)
}
  0x58   : > { %s2747_s6 = smov 128   ;;  %s2748_s2 = smov 8  }
  0x59   : > { %1735 = dma.hbm_to_vmem [thread:$0]  (!%p2328_p13), %s2767_s3, 2048, %s2332_s27, [#allocation8], %s2747_s6, %s2747_s6, %s2748_s2  }
  0x5a   : > { %s2185_s7 = smov [#allocation10]   ;;  %s2768_s5 = sld [smem:[#allocation24_spill]] }
  0x5b   : > { %s266_s15 = sshll.u32 %s2185_s7, 4  ;;  %s267_s15 = int_to_ptr.vmem [resolvable:$true] %s266_s15 }
  0x60   : > { %s1989_s12 = scalar_lea.hbm %s2768_s5, 1024 }
  0x61   : > { %p1990_p1 = scmp.ne.s32.totalorder %s2768_s5, %s1989_s12  ;;  %p1996_p9 = scmp.lt.u32.totalorder %s1989_s12, %s2768_s5 }
  0x63   : > { %p1992_p3 = pnand %p1990_p1, %p2342_p2 }
  0x65   : > { %p1993_p7 = pneg %p1992_p3 }
  0x67   : > { %p1998_p11 = pnand %p1996_p9, %p1993_p7 }
  0x69   : > { %2001 = shalt.err (!%p1998_p11)
}
  0x6a   : > { %s2002_s27 = scalar_lea.vmem %s267_s15, 1024  ;;  %p2010_p6 = scmp.lt.s32.totalorder %s267_s15, %s267_s15 }
  0x6b   : > { %p2003_p0 = scmp.ne.s32.totalorder %s267_s15, %s2002_s27  ;;  %p2011_p8 = scmp.lt.s32.totalorder %s2002_s27, %s2002_s27 }
  0x6d   : > { %p2005_p4 = pnand %p2003_p0, %p2342_p2  ;;  %p2012_p10 = por %p2011_p8, %p2010_p6 }
  0x6f   : > { %p2006_p5 = pneg %p2005_p4 }
  0x71   : > { %p2013_p12 = pnand %p2012_p10, %p2006_p5 }
  0x73   : > { %2016 = shalt.err (!%p2013_p12)
}
  0x74   : > { %s2769_s24 = smov 4   ;;  %s2770_s8 = smov 64  }
  0x75   : > { %1738 = dma.hbm_to_vmem [thread:$0]  (!%p2328_p13), %s2768_s5, 1024, %s267_s15, [#allocation11], %s2770_s8, %s2770_s8, %s2769_s24  }
  0x76   : > { %s34_s20 = sadd.s32 1, %s2169_s9  ;;  %s37_s22 = sadd.s32 1, %s2173_s10 }
  0x77   : > { %p35_p2 = scmp.ge.s32.totalorder %s34_s20, 2  ;;  %s44_s17 = sadd.s32 1, %s2157_s29 }
  0x78   : > { %p51_p1 = scmp.ne.s32.totalorder %s2157_s29, %s2153_s28  ;;  %p52_p3 = scmp.eq.s32.totalorder %s2177_s11, 0 }
  0x79   : > { %s2800_s20 = smov (%p35_p2, %s34_s20), 0  ;;  %s2802_s22 = smov (!%p35_p2, %s37_s22), %s2173_s10 }
  0x7a   : > { %s194_s7 = ssub.s32 %s2169_s9, %s2800_s20  ;;  %p39_p7 = scmp.ge.s32.totalorder %s2802_s22, 2 }
  0x7b   : > { %p1750_p9 = scmp.lt.s32.totalorder %s2177_s11, 4  ;;  %p2420_p13 = por %p52_p3, %p51_p1 }
  0x7c   : > { %s283_s13 = sand.u32 1, %s2157_s29   ;;  %s2804_s22 = smov (%p39_p7, %s2802_s22), 0 }
  0x7d   : > { %s1491_s23 = sshll.u32 %s283_s13, 5  ;;  %s41_s12 = ssub.s32 %s2173_s10, %s2804_s22 }
  0x7e   : > { %p42_p11 = scmp.eq.s32.totalorder %s41_s12, 0  ;;  %s195_s21 = sor.u32 %s194_s7, %s41_s12 }
  0x7f   : > { %p196_p0 = scmp.eq.s32.totalorder %s195_s21, 0  ;;  %s1550_s27 = sshll.u32 %s2173_s10, 9 }
  0x80   : > { %s2431_s24 = scalar_select %p42_p11, %s2157_s29, %s44_s17  }
  0x81   : > { %s2772_s8 = sadd.s32 1, %s2145_s26  ;;  %s2441_s2 = scalar_lea.hbm %s2727_s0, %s1550_s27 }
  0x82   : > { %s2436_s1 = scalar_select %p196_p0, %s2145_s26, %s2772_s8  }
  0x83   : > { %s287_s3 = scalar_lea.vmem [#allocation4], %s1491_s23  ;;  %p2449_p4 = pnand %p1750_p9, %p2420_p13 }
  0x84   : > { %s294_s5 = sshll.u32 %s287_s3, 4  ;;  %s2453_s7 = scalar_lea.sflag [#allocation5], %s283_s13  ;;  %s2443_s5 = int_to_ptr.vmem [resolvable:$true] %s294_s5 }
  0x85   : > { %s2017_s6 = scalar_lea.hbm %s2441_s2, 512  ;;  %p2019_p6 = pneg %p2449_p4 }
  0x86   : > { %p2018_p5 = scmp.ne.s32.totalorder %s2441_s2, %s2017_s6  ;;  %s2022_s15 = scalar_lea.hbm %s2727_s0, 1024 }
  0x87   : > { %p2023_p12 = scmp.lt.u32.totalorder %s2441_s2, %s2727_s0  ;;  %p2024_p2 = scmp.lt.u32.totalorder %s2022_s15, %s2017_s6 }
  0x88   : > { %p2020_p8 = pnand %p2019_p6, %p2018_p5  ;;  %p2026_p3 = scmp.lt.u32.totalorder %s2017_s6, %s2441_s2 }
  0x89   : > { %p2025_p1 = por %p2024_p2, %p2023_p12 }
  0x8a   : > { %p2021_p10 = pneg %p2020_p8 }
  0x8b   : > { %p2027_p7 = por %p2026_p3, %p2025_p1 }
  0x8d   : > { %p2028_p9 = pnand %p2027_p7, %p2021_p10 }
  0x8f   : > { %2031 = shalt.err (!%p2028_p9)
}
  0x90   : > { %s2032_s13 = scalar_lea.vmem %s2443_s5, 512  ;;  %s2186_s27 = smov [#allocation4]  }
  0x91   : > { %p2033_p13 = scmp.ne.s32.totalorder %s2443_s5, %s2032_s13  ;;  %s2037_s8 = sshll.u32 %s2186_s27, 4  ;;  %s2038_s8 = int_to_ptr.vmem [resolvable:$false] %s2037_s8 }
  0x92   : > { %s2039_s18 = scalar_lea.vmem %s2038_s8, 1024  ;;  %p2040_p5 = scmp.lt.s32.totalorder %s2443_s5, %s2038_s8 }
  0x93   : > { %p2035_p11 = pnand %p2033_p13, %p2019_p6  ;;  %p2041_p8 = scmp.lt.s32.totalorder %s2039_s18, %s2032_s13 }
  0x95   : > { %p2036_p0 = pneg %p2035_p11  ;;  %p2042_p12 = por %p2041_p8, %p2040_p5 }
  0x97   : > { %p2043_p2 = pnand %p2042_p12, %p2036_p0 }
  0x99   : > { %2046 = shalt.err (!%p2043_p2)
}
  0x9a   : > { %s2774_s6 = smov 8   ;;  %s2775_s3 = smov 128  }
  0x9b   : > { %1742 = dma.hbm_to_vmem [thread:$0]  (!%p2449_p4), %s2441_s2, 512, %s2443_s5, %s2453_s7, %s2775_s3, %s2775_s3, %s2774_s6  }
  0x9c   : > { %p2776_p6 = scmp.ne.s32.totalorder %s2763_s19, 0 }
  0x9d   : > { %s308_s23 = sand.u32 (!%p2776_p6), 1, %s2153_s28   ;;  %p2777_p10 = scmp.ne.s32.totalorder (!%p2776_p6), %s2758_s16, 0 }
  0x9e   : > { %306 = sbr.rel (%p2776_p6) target bundleno = 2552 (0x9f8), region = 48  ;;  %s1495_s15 = sshll.u32 (!%p2776_p6), %s308_s23, 5 }
  0x9f   : > { %s309_s12 = scalar_lea.sflag (!%p2776_p6), [#allocation5], %s308_s23  ;;  %s2487_s21 = scalar_lea.vmem (!%p2776_p6), [#allocation4], %s1495_s15 }
  0xa5   : > { %2120 = dma.done.wait (%p2777_p10), %s309_s12, 512  }
  0xa6   : > { %2122 = vsyncadd (%p2777_p10), %s309_s12, 4294966784  ;;  %p2778_p1 = scmp.ne.s32.totalorder %s2757_s14, 0 }
  0xa8   : > { %2124 = dma.done.wait (%p2778_p1), [#allocation8], 3072  }
  0xa9   : > { %2126 = vsyncadd (%p2778_p1), [#allocation8], 4294964224 }
  0xaa   : > { %2128 = dma.done.wait (%p2778_p1), [#allocation11], 1024  }
  0xab   : > { %2130 = vsyncadd (%p2778_p1), [#allocation11], 4294966272  ;;  %s352_s5 = sand.u32 1, %s2141_s25   ;;  %p1500_p4 = scmp.ne.s32.totalorder %s2161_s30, 0 }
  0xac   : > { %s1499_s19 = sshll.u32 %s352_s5, 4  ;;  %v1861_v0 = vld [vmem:[#allocation9 + $0x4] ss:$8 sps:$4 sm:$0xff] (!%p1500_p4)   ;;  %v1863_v1 = vld [vmem:[#allocation9] ss:$8 sps:$4 sm:$0xff] (!%p1500_p4)   ;;  %v2187_v2 = vmov (!%p1500_p4), 0   ;;  %v385_v23 = vlaneseq (!%p1500_p4) }
  0xad   : > { %s2504_s2 = scalar_lea.vmem [#allocation12], %s1499_s19  ;;  %360 = sbr.rel (%p1500_p4) target bundleno = 560 (0x230), region = 68  ;;  %507 = vmatprep.mubr.bf16.mxu0 (!%p1500_p4), %v2187_v2  ;;  %517 = vmatprep.mubr.bf16.mxu1 (!%p1500_p4), %v2187_v2  ;;  %v1864_v3 = vld [vmem:[#allocation9 + $0x14] ss:$8 sps:$4 sm:$0xff] (!%p1500_p4)   ;;  %v1866_v4 = vld [vmem:[#allocation9 + $0x10] ss:$8 sps:$4 sm:$0xff] (!%p1500_p4)  }
  0xae   : > { %475 = vmatprep.subr.bf16.mxu0 (!%p1500_p4), %v1861_v0  ;;  %1697 = vmatprep.subr.bf16.mxu1 (!%p1500_p4), %v1861_v0  ;;  %v1867_v5 = vld [vmem:[#allocation9 + $0x24] ss:$8 sps:$4 sm:$0xff] (!%p1500_p4)   ;;  %v1869_v6 = vld [vmem:[#allocation9 + $0x20] ss:$8 sps:$4 sm:$0xff] (!%p1500_p4)   ;;  %v1870_v7 = vld [vmem:[#allocation9 + $0x34] ss:$8 sps:$4 sm:$0xff] (!%p1500_p4)  }
  0xaf   : > { %476 = vmatpush1.bf16.msra.mxu0 (!%p1500_p4), %v1863_v1  ;;  %1705 = vmatpush1.bf16.msra.mxu1 (!%p1500_p4), %v1863_v1  ;;  %v1872_v8 = vld [vmem:[#allocation9 + $0x30] ss:$8 sps:$4 sm:$0xff] (!%p1500_p4)   ;;  %v1873_v9 = vld [vmem:[#allocation9 + $0x44] ss:$8 sps:$4 sm:$0xff] (!%p1500_p4)   ;;  %v1875_v10 = vld [vmem:[#allocation9 + $0x40] ss:$8 sps:$4 sm:$0xff] (!%p1500_p4)  }
  0xb0   : > { %477 = vmatprep.subr.bf16.mxu0 (!%p1500_p4), %v1864_v3  ;;  %1698 = vmatprep.subr.bf16.mxu1 (!%p1500_p4), %v1864_v3  ;;  %v1876_v11 = vld [vmem:[#allocation9 + $0x54] ss:$8 sps:$4 sm:$0xff] (!%p1500_p4)   ;;  %v1878_v12 = vld [vmem:[#allocation9 + $0x50] ss:$8 sps:$4 sm:$0xff] (!%p1500_p4)   ;;  %v1879_v13 = vld [vmem:[#allocation9 + $0x64] ss:$8 sps:$4 sm:$0xff] (!%p1500_p4)  }
  0xb1   : > { %v1881_v14 = vld [vmem:[#allocation9 + $0x60] ss:$8 sps:$4 sm:$0xff] (!%p1500_p4)   ;;  %v1882_v15 = vld [vmem:[#allocation9 + $0x74] ss:$8 sps:$4 sm:$0xff] (!%p1500_p4)   ;;  %v1884_v16 = vld [vmem:[#allocation9 + $0x70] ss:$8 sps:$4 sm:$0xff] (!%p1500_p4)  }
  0xb2   : > { %v361_v17 = vld [vmem:[%s2487_s21] sm:$0xff] (!%p1500_p4)  ;;  %v362_v18 = vld [vmem:[%s2487_s21 + $0x8] sm:$0xff] (!%p1500_p4)  ;;  %v363_v19 = vld [vmem:[%s2487_s21 + $0x10] sm:$0xff] (!%p1500_p4)  ;;  %v386_v24 = vshrl.u32 (!%p1500_p4), %v385_v23, 7  ;;  %vm532_vm0 = vcmask (!%p1500_p4), 261120   ;;  %s2188_s17 = smov (!%p1500_p4), 64  }
  0xb3   : > { %478 = vmatpush1.bf16.msra.mxu0 (!%p1500_p4), %v1866_v4  ;;  %1706 = vmatpush1.bf16.msra.mxu1 (!%p1500_p4), %v1866_v4  ;;  %v364_v20 = vld [vmem:[%s2487_s21 + $0x18] sm:$0xff] (!%p1500_p4)  ;;  %v365_v21 = vpack.c.bf16 (!%p1500_p4), %v362_v18, %v361_v17  ;;  %v383_v26 = vld [vmem:[%s2731_s4] sm:$0x3] (!%p1500_p4)  ;;  %s2189_s7 = smov (!%p1500_p4), 96   ;;  %s2190_s13 = smov (!%p1500_p4), 32  }
  0xb4   : > { %479 = vmatprep.subr.bf16.mxu0 %v1867_v5  ;;  %1699 = vmatprep.subr.bf16.mxu1 %v1867_v5  ;;  %v366_v22 = vpack.c.bf16 %v364_v20, %v363_v19  ;;  %v387_v25 = vsub.s32 0, %v386_v24  ;;  %v391_v27 = vsub.s32 1, %v386_v24 }
  0xb6   : > { %v388_v28 = vrot.slane %v383_v26, %v387_v25  ;;  %v392_v31 = vrot.slane %v383_v26, %v391_v27 }
  0xb7   : > { %480 = vmatpush1.bf16.msra.mxu0 %v1869_v6  ;;  %1707 = vmatpush1.bf16.msra.mxu1 %v1869_v6 }
  0xb8   : > { %481 = vmatprep.subr.bf16.mxu0 %v1870_v7  ;;  %1700 = vmatprep.subr.bf16.mxu1 %v1870_v7 }
  0xbb   : > { %482 = vmatpush1.bf16.msra.mxu0 %v1872_v8  ;;  %1708 = vmatpush1.bf16.msra.mxu1 %v1872_v8 }
  0xbc   : > { %483 = vmatprep.subr.bf16.mxu0 %v1873_v9  ;;  %1701 = vmatprep.subr.bf16.mxu1 %v1873_v9 }
  0xbf   : > { %484 = vmatpush1.bf16.msra.mxu0 %v1875_v10  ;;  %1709 = vmatpush1.bf16.msra.mxu1 %v1875_v10 }
  0xc0   : > { %485 = vmatprep.subr.bf16.mxu0 %v1876_v11  ;;  %1702 = vmatprep.subr.bf16.mxu1 %v1876_v11 }
  0xc3   : > { %486 = vmatpush1.bf16.msra.mxu0 %v1878_v12  ;;  %1710 = vmatpush1.bf16.msra.mxu1 %v1878_v12 }
  0xc4   : > { %487 = vmatprep.subr.bf16.mxu0 %v1879_v13  ;;  %1703 = vmatprep.subr.bf16.mxu1 %v1879_v13 }
  0xc7   : > { %488 = vmatpush1.bf16.msra.mxu0 %v1881_v14  ;;  %1711 = vmatpush1.bf16.msra.mxu1 %v1881_v14 }
  0xc8   : > { %489 = vmatprep.subr.bf16.mxu0 %v1882_v15  ;;  %1704 = vmatprep.subr.bf16.mxu1 %v1882_v15 }
  0xcb   : > { %490 = vmatpush1.bf16.msra.mxu0 %v1884_v16  ;;  %1712 = vmatpush1.bf16.msra.mxu1 %v1884_v16 }
  0xce   : > { %508 = vmatmul.mubr.bf16.vlgmr.msra.gmra.mrb[0].mxu0 %v365_v21  ;;  %518 = vmatmul.mubr.bf16.vlgmr.msra.gmra.mrb[0].mxu1 %v366_v22 }
 0x1a1   : > { %v509_v29 = vpop.f32.mrb[0].mxu0  ;;  %v519_v30 = vpop.f32.mrb[0].mxu1 }
 0x1a2   : > { %v511_v32 = vpop.f32.mrb[1].mxu0  ;;  %v521_v33 = vpop.f32.mrb[1].mxu1  ;;  %v510_v36 = vadd.f32 %v509_v29, %v388_v28  ;;  %v520_v37 = vadd.f32 %v519_v30, %v388_v28 }
 0x1a3   : > { %v513_v34 = vpop.f32.mrb[2].mxu0  ;;  %v523_v35 = vpop.f32.mrb[2].mxu1  ;;  %v512_v42 = vadd.f32 %v511_v32, %v392_v31  ;;  %v522_v43 = vadd.f32 %v521_v33, %v392_v31 }
 0x1a4   : > { %v514_v38 = vadd.f32 %v513_v34, %v388_v28  ;;  %v524_v39 = vadd.f32 %v523_v35, %v388_v28  ;;  %v515_v40 = vpop.f32.mrb[3].mxu0  ;;  %v525_v41 = vpop.f32.mrb[3].mxu1 }
 0x1a5   : > { %v516_v44 = vadd.f32 %v515_v40, %v392_v31  ;;  %v526_v45 = vadd.f32 %v525_v41, %v392_v31 }
 0x1a6   : > { %v528_v46 = vpack.c.bf16 %v514_v38, %v510_v36  ;;  %v530_v47 = vpack.c.bf16 %v524_v39, %v520_v37 }
 0x1a7   : > { %v529_v48 = vpack.c.bf16 %v516_v44, %v512_v42  ;;  %v531_v49 = vpack.c.bf16 %v526_v45, %v522_v43 }
 0x1a8   : > { %533 = vst.msk [vmem:[#allocation2] sm:$0xff] %vm532_vm0, %v528_v46  ;;  %534 = vst.msk [vmem:[#allocation2 + $0x8] sm:$0xff] %vm532_vm0, %v530_v47  ;;  %561 = vrot.lane.b32.xlu1 %v530_v47, %s2188_s17  ;;  %539 = vrot.lane.b32.xlu0 %v528_v46, %s2189_s7 }
 0x1a9   : > { %535 = vst.msk [vmem:[#allocation3] sm:$0xff] %vm532_vm0, %v529_v48  ;;  %536 = vst.msk [vmem:[#allocation3 + $0x8] sm:$0xff] %vm532_vm0, %v531_v49 }
 0x1ac   : > { %579 = vrot.lane.b32.xlu1 %v530_v47, %s2190_s13  ;;  %541 = vrot.lane.b32.xlu0 %v530_v47, %s2189_s7 }
 0x1b0   : > { %550 = vrot.lane.b32.xlu1 %v529_v48, %s2189_s7  ;;  %559 = vrot.lane.b32.xlu0 %v528_v46, %s2188_s17 }
 0x1b4   : > { %552 = vrot.lane.b32.xlu1 %v531_v49, %s2189_s7  ;;  %577 = vrot.lane.b32.xlu0 %v528_v46, %s2190_s13 }
 0x1b8   : > { %570 = vrot.lane.b32.xlu1 %v531_v49, %s2188_s17  ;;  %568 = vrot.lane.b32.xlu0 %v529_v48, %s2188_s17 }
 0x1bc   : > { %588 = vrot.lane.b32.xlu1 %v531_v49, %s2190_s13  ;;  %586 = vrot.lane.b32.xlu0 %v529_v48, %s2190_s13 }
 0x21a   : > { %v562_v50 = vpop.permute.xlu1 %561  ;;  %v540_v51 = vpop.permute.xlu0 %539 }
 0x21b   : > { %567 = vst.msk [vmem:[#allocation2 + $0x28] sm:$0xff] %vm532_vm0, %v562_v50  ;;  %546 = vst.msk [vmem:[#allocation2 + $0x10] sm:$0xff] %vm532_vm0, %v540_v51 }
 0x21e   : > { %v580_v52 = vpop.permute.xlu1 %579  ;;  %v542_v53 = vpop.permute.xlu0 %541 }
 0x21f   : > { %585 = vst.msk [vmem:[#allocation2 + $0x38] sm:$0xff] %vm532_vm0, %v580_v52  ;;  %547 = vst.msk [vmem:[#allocation2 + $0x18] sm:$0xff] %vm532_vm0, %v542_v53 }
 0x222   : > { %v551_v54 = vpop.permute.xlu1 %550  ;;  %v560_v55 = vpop.permute.xlu0 %559 }
 0x223   : > { %557 = vst.msk [vmem:[#allocation3 + $0x10] sm:$0xff] %vm532_vm0, %v551_v54  ;;  %566 = vst.msk [vmem:[#allocation2 + $0x20] sm:$0xff] %vm532_vm0, %v560_v55 }
 0x226   : > { %v553_v56 = vpop.permute.xlu1 %552  ;;  %v578_v57 = vpop.permute.xlu0 %577 }
 0x227   : > { %558 = vst.msk [vmem:[#allocation3 + $0x18] sm:$0xff] %vm532_vm0, %v553_v56  ;;  %584 = vst.msk [vmem:[#allocation2 + $0x30] sm:$0xff] %vm532_vm0, %v578_v57 }
 0x22a   : > { %v571_v58 = vpop.permute.xlu1 %570  ;;  %v569_v59 = vpop.permute.xlu0 %568 }
 0x22b   : > { %576 = vst.msk [vmem:[#allocation3 + $0x28] sm:$0xff] %vm532_vm0, %v571_v58  ;;  %575 = vst.msk [vmem:[#allocation3 + $0x20] sm:$0xff] %vm532_vm0, %v569_v59 }
 0x22e   : > { %v589_v60 = vpop.permute.xlu1 %588  ;;  %v587_v61 = vpop.permute.xlu0 %586 }
 0x22f   : > { %594 = vst.msk [vmem:[#allocation3 + $0x38] sm:$0xff] %vm532_vm0, %v589_v60  ;;  %593 = vst.msk [vmem:[#allocation3 + $0x30] sm:$0xff] %vm532_vm0, %v587_v61 }
 0x230 PF: > { %v1885_v62 = vld [vmem:[#allocation7] sm:$0xff]   ;;  %v2191_v63 = vmov 0.0   ;;  %v1886_v0 = vld [vmem:[#allocation7 + $0x8] sm:$0xff]   ;;  %vm2192_vm1 = vmmov 0   ;;  %v1887_v1 = vld [vmem:[#allocation7 + $0x10] sm:$0xff]   ;;  %vm719_vm2 = vcmask 261120  }
 0x231   : > { %1593 = vmatprep.subr.bf16.mxu0 %v2191_v63  ;;  %1613 = vmatprep.subr.bf16.mxu1 %v2191_v63  ;;  %v715_v2 = vld [vmem:[#allocation2] sm:$0xff]  ;;  %v1888_v3 = vld [vmem:[#allocation7 + $0x18] sm:$0xff]   ;;  %v1890_v6 = vld [vmem:[#allocation7 + $0x28] sm:$0xff]   ;;  %s1517_s27 = sshll.u32 %s2161_s30, 4  ;;  %s2779_s3 = sld [smem:[#allocation22_spill]]  ;;  %vm1229_vm3 = vcmask 523264  }
 0x232   : > { %1594 = vmatpush3.bf16.msra.mxu0 %v1885_v62  ;;  %1609 = vmatprep.mubr.msk.bf16.mxu0 %vm2192_vm1, %v2191_v63  ;;  %v724_v4 = vsel %vm719_vm2, %v715_v2, 0  ;;  %v1889_v5 = vld [vmem:[#allocation7 + $0x20] sm:$0xff]   ;;  %v1891_v7 = vld [vmem:[#allocation7 + $0x30] sm:$0xff]   ;;  %s596_s8 = scalar_lea.vmem %s2487_s21, %s1517_s27 [#allocation4]  ;;  %v1892_v8 = vld [vmem:[#allocation7 + $0x38] sm:$0xff]   ;;  %s2193_s23 = smov 96   ;;  %vm1232_vm4 = vcmask 785408  }
 0x233   : > { %1595 = vmatprep.subr.bf16.mxu0 %v2191_v63  ;;  %1617 = vmatprep.mubr.msk.bf16.mxu1 %vm2192_vm1, %v2191_v63  ;;  %v597_v9 = vld [vmem:[%s596_s8] sm:$0xff]  ;;  %v598_v10 = vld [vmem:[%s596_s8 + $0x8] sm:$0xff]  ;;  %s2194_s15 = smov 64   ;;  %v839_v38 = vld [vmem:[#allocation2 + $0x10] sm:$0xff]  ;;  %s2195_s12 = smov 32  }
 0x234   : > { %1614 = vmatpush3.bf16.xpose.msra.mxu1 %v724_v4  ;;  %v599_v11 = vpack.c.bf16 %v598_v10, %v597_v9  ;;  %v716_v12 = vld [vmem:[#allocation2 + $0x8] sm:$0xff]  ;;  %v717_v30 = vld [vmem:[#allocation3] sm:$0xff]  ;;  %v851_v42 = vsel %vm719_vm2, %v839_v38, 0  ;;  %v840_v43 = vld [vmem:[#allocation2 + $0x18] sm:$0xff]  ;;  %s2780_s21 = sld [smem:[#allocation18_spill]]  ;;  %s1545_s19 = sshll.u32 %s2161_s30, 1 }
 0x235   : > { %1615 = vmatprep.subr.bf16.mxu1 %v2191_v63  ;;  %v727_v13 = vsel %vm719_vm2, %v716_v12, 0  ;;  %v718_v31 = vld [vmem:[#allocation3 + $0x8] sm:$0xff]  ;;  %v854_v44 = vsel %vm719_vm2, %v840_v43, 0  ;;  %v966_v45 = vld [vmem:[#allocation2 + $0x20] sm:$0xff]  ;;  %s2781_s13 = sld [smem:[#allocation25_spill]]  ;;  %s2782_s27 = sld [smem:[#allocation19_spill]] }
 0x236   : > { %1596 = vmatpush3.bf16.msra.mxu0 %v1886_v0  ;;  %v977_v46 = vsel %vm719_vm2, %v966_v45, 0  ;;  %v967_v48 = vld [vmem:[#allocation2 + $0x28] sm:$0xff]  ;;  %s1366_s18 = sshll.u32 %s2504_s2, 4  ;;  %s2666_s30 = scalar_lea.sflag [#allocation6], %s352_s5  ;;  %s2660_s18 = int_to_ptr.vmem [resolvable:$true] %s1366_s18 }
 0x237   : > { %1597 = vmatprep.subr.bf16.mxu0 %v2191_v63  ;;  %v1518_v14 = vld [vmem:[%s2779_s3] ss:$0 sm:$0xff]  ;;  %v980_v49 = vsel %vm719_vm2, %v967_v48, 0  ;;  %v970_v4 = vld [vmem:[#allocation3 + $0x28] sm:$0xff]  ;;  %v1096_v48 = vld [vmem:[#allocation3 + $0x38] sm:$0xff] }
 0x23a   : > { %1598 = vmatpush3.bf16.msra.mxu0 %v1887_v1  ;;  %s1546_s14 = sshll.u32 %s2780_s21, 2  ;;  %s2196_s21 = smov [#allocation12]  }
 0x23b   : > { %1599 = vmatprep.subr.bf16.mxu0 %v2191_v63  ;;  %s1363_s16 = sadd.s32 %s1546_s14, %s1545_s19  ;;  %p2784_p7 = scmp.ne.s32.totalorder %s2782_s27, 0 }
 0x23c   : > { %1616 = vmatpush3.bf16.xpose.msra.mxu1 %v727_v13  ;;  %s1547_s8 = sshll.u32 %s1363_s16, 7  ;;  %s2051_s19 = sshll.u32 %s2196_s21, 4  ;;  %s2052_s19 = int_to_ptr.vmem [resolvable:$false] %s2051_s19 }
 0x23d   : > { %1621 = vmatprep.subr.bf16.mxu1 %v2191_v63  ;;  %s2053_s14 = scalar_lea.vmem %s2052_s19, 512  ;;  %p2054_p11 = scmp.lt.s32.totalorder %s2660_s18, %s2052_s19 }
 0x23e   : > { %1600 = vmatpush3.bf16.msra.mxu0 %v1888_v3  ;;  %v969_v3 = vld [vmem:[#allocation3 + $0x20] sm:$0xff] }
 0x23f   : > { %1601 = vmatprep.subr.bf16.mxu0 %v2191_v63 }
 0x242   : > { %1602 = vmatpush3.bf16.msra.mxu0 %v1889_v5 }
 0x243   : > { %1603 = vmatprep.subr.bf16.mxu0 %v2191_v63 }
 0x246   : > { %1604 = vmatpush3.bf16.msra.mxu0 %v1890_v6  ;;  %v842_v6 = vld [vmem:[#allocation3 + $0x10] sm:$0xff] }
 0x247   : > { %1605 = vmatprep.subr.bf16.mxu0 %v2191_v63 }
 0x24a   : > { %1606 = vmatpush3.bf16.msra.mxu0 %v1891_v7  ;;  %v843_v7 = vld [vmem:[#allocation3 + $0x18] sm:$0xff] }
 0x24b   : > { %1607 = vmatprep.subr.bf16.mxu0 %v2191_v63 }
 0x24e   : > { %1608 = vmatpush3.bf16.msra.mxu0 %v1892_v8 }
 0x24f   : > { %1637 = vmatprep.subr.bf16.mxu0 %v2191_v63 }
 0x251   : > { %1610 = vmatmul.mubr.bf16.vlgmr.msra.gmra.mrb[0].mxu0 %v599_v11 }
 0x252   : > { %1641 = vmatprep.mubr.msk.bf16.mxu0 %vm2192_vm1, %v2191_v63  ;;  %1638 = vmatpush3.bf16.msra.mxu0 %v842_v6 }
 0x253   : > { %1639 = vmatprep.subr.bf16.mxu0 %v2191_v63 }
 0x256   : > { %1640 = vmatpush3.bf16.msra.mxu0 %v843_v7 }
 0x257   : > { %1669 = vmatprep.subr.bf16.mxu0 %v2191_v63 }
 0x324   : > { %v705_v15 = vpop.f32.mrb[0].mxu0 }
 0x325   : > { %v706_v16 = vadd.f32 %v1518_v14, %v705_v15  ;;  %v1611_v17 = vpop.f32.mrb[1].mxu0 }
 0x326   : > { %v708_v18 = vpop.f32.mrb[2].mxu0 }
 0x327   : > { %v709_v19 = vadd.f32 %v1518_v14, %v708_v18  ;;  %v1612_v20 = vpop.f32.mrb[3].mxu0  ;;  %v712_v21 = vmul.f32 0.17677669, %v706_v16  ;;  %v1092_v14 = vld [vmem:[#allocation2 + $0x30] sm:$0xff] }
 0x328   : > { %v1093_v20 = vld [vmem:[#allocation2 + $0x38] sm:$0xff] }
 0x329   : > { %v713_v22 = vmul.f32 0.17677669, %v709_v19  ;;  %v1103_v19 = vsel %vm719_vm2, %v1092_v14, 0 }
 0x32b   : > { %v2555_v23 = vpack.c.bf16 %v713_v22, %v712_v21  ;;  %v1106_v21 = vsel %vm719_vm2, %v1093_v20, 0  ;;  %v1896_v20 = vld [vmem:[#allocation10 + $0x18] sm:$0xff]  }
 0x32d   : > { %845 = vrot.lane.b32.xlu1 %v2555_v23, %s2193_s23  ;;  %1618 = vmatmul.mubr.msk.bf16.vlgmr.msra.gmra.mrb[0].mxu1 %vm719_vm2, %v2555_v23 }
 0x32e   : > { %1625 = vmatprep.mubr.msk.bf16.mxu1 %vm2192_vm1, %v2191_v63  ;;  %1622 = vmatpush3.bf16.msra.mxu1 %v717_v30 }
 0x32f   : > { %1623 = vmatprep.subr.bf16.mxu1 %v2191_v63 }
 0x331   : > { %971 = vrot.lane.b32.xlu1 %v2555_v23, %s2194_s15 }
 0x332   : > { %1624 = vmatpush3.bf16.msra.mxu1 %v718_v31 }
 0x333   : > { %1629 = vmatprep.subr.bf16.mxu1 %v2191_v63 }
 0x39f   : > { %v846_v47 = vpop.permute.xlu1 %845 }
 0x3a3   : > { %v972_v50 = vpop.permute.xlu1 %971 }
 0x400   : > { %v763_v24 = vpop.f32.mrb[0].mxu1 }
 0x401   : > { %v1619_v25 = vpop.f32.mrb[1].mxu1  ;;  %v770_v26 = vsel %vm719_vm2, %v763_v24, -inf }
 0x402   : > { %771 = vmax.xlane.f32.xlu0 %v770_v26  ;;  %v766_v27 = vpop.f32.mrb[2].mxu1 }
 0x403   : > { %v1620_v28 = vpop.f32.mrb[3].mxu1  ;;  %v773_v29 = vsel %vm719_vm2, %v766_v27, -inf }
 0x406   : > { %774 = vmax.xlane.f32.xlu0 %v773_v29 }
 0x48f   : > { %v772_v32 = vpop.xlane.xlu0 %771 }
 0x490   : > { %v776_v33 = vsub.f32 %v763_v24, %v772_v32 }
 0x492   : > { %v778_v34 = vmul.f32 1.442695, %v776_v33 }
 0x493   : > { %v775_v35 = vpop.xlane.xlu0 %774 }
 0x494   : > { %v777_v36 = vsub.f32 %v766_v27, %v775_v35  ;;  %1901 = vpow2.f32 %v778_v34 }
 0x496   : > { %v780_v37 = vmul.f32 1.442695, %v777_v36 }
 0x498   : > { %1903 = vpow2.f32 %v780_v37 }
 0x49e   : > { %v2569_v39 = vpop.eup %1901 }
 0x4a2   : > { %v2571_v40 = vpop.eup %1903 }
 0x4a3   : > { %v788_v41 = vpack.c.bf16 %v2571_v40, %v2569_v39 }
 0x4a5   : > { %1626 = vmatmul.mubr.msk.bf16.vlgmr.msra.gmra.mrb[4].mxu1 %vm719_vm2, %v788_v41 }
 0x4a6   : > { %1630 = vmatpush3.bf16.xpose.msra.mxu1 %v851_v42  ;;  %1633 = vmatprep.mubr.msk.bf16.mxu1 %vm2192_vm1, %v2191_v63 }
 0x4a7   : > { %1631 = vmatprep.subr.bf16.mxu1 %v2191_v63 }
 0x4ae   : > { %1632 = vmatpush3.bf16.xpose.msra.mxu1 %v854_v44 }
 0x4af   : > { %1645 = vmatprep.subr.bf16.mxu1 %v2191_v63 }
 0x4b5   : > { %1634 = vmatmul.mubr.msk.bf16.vlgmr.msra.gmra.mrb[8].mxu1 %vm719_vm2, %v846_v47  ;;  %v1095_v47 = vld [vmem:[#allocation3 + $0x30] sm:$0xff] }
 0x4b6   : > { %1646 = vmatpush3.bf16.xpose.msra.mxu1 %v977_v46  ;;  %1649 = vmatprep.mubr.msk.bf16.mxu1 %vm2192_vm1, %v2191_v63 }
 0x4b7   : > { %1647 = vmatprep.subr.bf16.mxu1 %v2191_v63 }
 0x4be   : > { %1648 = vmatpush3.bf16.xpose.msra.mxu1 %v980_v49 }
 0x4bf   : > { %1653 = vmatprep.subr.bf16.mxu1 %v2191_v63 }
 0x4c5   : > { %1650 = vmatmul.mubr.msk.bf16.vlgmr.msra.gmra.mrb[12].mxu1 %vm719_vm2, %v972_v50 }
 0x4c6   : > { %1657 = vmatprep.mubr.msk.bf16.mxu1 %vm2192_vm1, %v2191_v63  ;;  %1654 = vmatpush3.bf16.msra.mxu1 %v969_v3 }
 0x4c7   : > { %1655 = vmatprep.subr.bf16.mxu1 %v2191_v63 }
 0x4ca   : > { %1656 = vmatpush3.bf16.msra.mxu1 %v970_v4 }
 0x4cb   : > { %1661 = vmatprep.subr.bf16.mxu1 %v2191_v63 }
 0x578   : > { %v2592_v51 = vpop.f32.mrb[4].mxu1 }
 0x579   : > { %v1627_v52 = vpop.f32.mrb[5].mxu1 }
 0x57a   : > { %v2594_v53 = vpop.f32.mrb[6].mxu1 }
 0x57b   : > { %v1628_v54 = vpop.f32.mrb[7].mxu1 }
 0x588   : > { %v890_v55 = vpop.f32.mrb[8].mxu1 }
 0x589   : > { %v1635_v56 = vpop.f32.mrb[9].mxu1  ;;  %v897_v5 = vsel %vm719_vm2, %v890_v55, -inf }
 0x58a   : > { %v893_v57 = vpop.f32.mrb[10].mxu1 }
 0x58b   : > { %v1636_v58 = vpop.f32.mrb[11].mxu1  ;;  %v900_v2 = vsel %vm719_vm2, %v893_v57, -inf }
 0x598   : > { %v1016_v59 = vpop.f32.mrb[12].mxu1 }
 0x599   : > { %v1651_v60 = vpop.f32.mrb[13].mxu1  ;;  %v1023_v61 = vsel %vm719_vm2, %v1016_v59, -inf }
 0x59a   : > { %1024 = vmax.xlane.f32.xlu0 %v1023_v61  ;;  %v1019_v62 = vpop.f32.mrb[14].mxu1 }
 0x59b   : > { %v1652_v0 = vpop.f32.mrb[15].mxu1  ;;  %v1026_v1 = vsel %vm719_vm2, %v1019_v62, -inf }
 0x59c   : > { %1027 = vmax.xlane.f32.xlu1 %v1026_v1 }
 0x5a0   : > { %901 = vmax.xlane.f32.xlu1 %v900_v2 }
 0x5b0   : > { %1097 = vrot.lane.b32.xlu0 %v2555_v23, %s2195_s12 }
 0x5cf   : > { %898 = vmax.xlane.f32.xlu0 %v897_v5  ;;  %v782_v5 = vsel %vm719_vm2, %v2569_v39, 0.0 }
 0x627   : > { %v1025_v8 = vpop.xlane.xlu0 %1024 }
 0x628   : > { %v1029_v9 = vsub.f32 %v1016_v59, %v1025_v8 }
 0x629   : > { %v1028_v10 = vpop.xlane.xlu1 %1027 }
 0x62a   : > { %v1031_v11 = vmul.f32 1.442695, %v1029_v9  ;;  %v1030_v12 = vsub.f32 %v1019_v62, %v1028_v10  ;;  %v785_v10 = vsel %vm719_vm2, %v2571_v40, 0.0  ;;  %v1895_v40 = vld [vmem:[#allocation10 + $0x10] sm:$0xff]  }
 0x62b   : > { %v1098_v22 = vpop.permute.xlu0 %1097 }
 0x62c   : > { %v1033_v13 = vmul.f32 1.442695, %v1030_v12  ;;  %1905 = vpow2.f32 %v1031_v11 }
 0x62d   : > { %v902_v23 = vpop.xlane.xlu1 %901 }
 0x62e   : > { %1907 = vpow2.f32 %v1033_v13  ;;  %v904_v24 = vsub.f32 %v893_v57, %v902_v23  ;;  %v1899_v23 = vld [vmem:[#allocation10 + $0x30] sm:$0xff]  }
 0x630   : > { %v907_v25 = vmul.f32 1.442695, %v904_v24  ;;  %v1900_v24 = vld [vmem:[#allocation10 + $0x38] sm:$0xff]  }
 0x632   : > { %1909 = vpow2.f32 %v907_v25 }
 0x636   : > { %v1906_v15 = vpop.eup %1905 }
 0x637   : > { %v1035_v46 = vsel %vm719_vm2, %v1906_v15, 0.0 }
 0x638   : > { %v1908_v16 = vpop.eup %1907 }
 0x639   : > { %v1038_v17 = vsel %vm719_vm2, %v1908_v16, 0.0  ;;  %v1041_v18 = vpack.c.bf16 %v1908_v16, %v1906_v15 }
 0x63a   : > { %1039 = vadd.xlane.f32.xlu0 %v1038_v17 }
 0x63b   : > { %1658 = vmatmul.mubr.msk.bf16.vlgmr.msra.gmra.mrb[16].mxu1 %vm719_vm2, %v1041_v18  ;;  %v1893_v18 = vld [vmem:[#allocation10] sm:$0xff]  }
 0x63c   : > { %1662 = vmatpush3.bf16.xpose.msra.mxu1 %v1103_v19  ;;  %1665 = vmatprep.mubr.msk.bf16.mxu1 %vm2192_vm1, %v2191_v63  ;;  %v1910_v29 = vpop.eup %1909  ;;  %v1894_v19 = vld [vmem:[#allocation10 + $0x8] sm:$0xff]  }
 0x63d   : > { %1663 = vmatprep.subr.bf16.mxu1 %v2191_v63  ;;  %v912_v45 = vsel %vm719_vm2, %v1910_v29, 0.0 }
 0x644   : > { %1664 = vmatpush3.bf16.xpose.msra.mxu1 %v1106_v21  ;;  %v1897_v21 = vld [vmem:[#allocation10 + $0x20] sm:$0xff]  }
 0x64b   : > { %1666 = vmatmul.mubr.msk.bf16.vlgmr.msra.gmra.mrb[20].mxu1 %vm719_vm2, %v1098_v22  ;;  %v1898_v22 = vld [vmem:[#allocation10 + $0x28] sm:$0xff]  }
 0x65c   : > { %v899_v26 = vpop.xlane.xlu0 %898 }
 0x65d   : > { %v903_v27 = vsub.f32 %v890_v55, %v899_v26 }
 0x65f   : > { %v905_v28 = vmul.f32 1.442695, %v903_v27 }
 0x661   : > { %1911 = vpow2.f32 %v905_v28 }
 0x66b   : > { %v1912_v30 = vpop.eup %1911 }
 0x66c   : > { %v915_v31 = vpack.c.bf16 %v1910_v29, %v1912_v30  ;;  %v909_v44 = vsel %vm719_vm2, %v1912_v30, 0.0 }
 0x66e   : > { %1642 = vmatmul.mubr.msk.bf16.vlgmr.msra.gmra.mrb[4].mxu0 %vm719_vm2, %v915_v31 }
 0x66f   : > { %1673 = vmatprep.mubr.msk.bf16.mxu0 %vm2192_vm1, %v2191_v63  ;;  %1670 = vmatpush3.bf16.msra.mxu0 %v1095_v47 }
 0x670   : > { %1671 = vmatprep.subr.bf16.mxu0 %v2191_v63 }
 0x673   : > { %1672 = vmatpush3.bf16.msra.mxu0 %v1096_v48  ;;  %v1535_v48 = vld [vmem:[%s2781_s13] ss:$0 sm:$0xff] }
 0x674   : > { %1677 = vmatprep.subr.bf16.mxu0 %v2191_v63 }
 0x6c7   : > { %v1040_v0 = vpop.xlane.xlu0 %1039 }
 0x70e   : > { %v2617_v32 = vpop.f32.mrb[16].mxu1 }
 0x70f   : > { %v1659_v33 = vpop.f32.mrb[17].mxu1 }
 0x710   : > { %v1082_v34 = vpop.f32.mrb[18].mxu1 }
 0x711   : > { %v1660_v35 = vpop.f32.mrb[19].mxu1 }
 0x71e   : > { %v1142_v36 = vpop.f32.mrb[20].mxu1 }
 0x71f   : > { %v1667_v37 = vpop.f32.mrb[21].mxu1  ;;  %v1149_v38 = vsel %vm719_vm2, %v1142_v36, -inf }
 0x720   : > { %1150 = vmax.xlane.f32.xlu1 %v1149_v38  ;;  %v1145_v41 = vpop.f32.mrb[22].mxu1 }
 0x721   : > { %v1668_v42 = vpop.f32.mrb[23].mxu1  ;;  %v1152_v43 = vsel %vm719_vm2, %v1145_v41, -inf }
 0x724   : > { %1153 = vmax.xlane.f32.xlu1 %v1152_v43 }
 0x728   : > { %910 = vadd.xlane.f32.xlu1 %v909_v44 }
 0x72c   : > { %913 = vadd.xlane.f32.xlu1 %v912_v45 }
 0x730   : > { %1036 = vadd.xlane.f32.xlu1 %v1035_v46 }
 0x741   : > { %v953_v49 = vpop.f32.mrb[4].mxu0 }
 0x742   : > { %v1643_v50 = vpop.f32.mrb[5].mxu0 }
 0x743   : > { %v956_v52 = vpop.f32.mrb[6].mxu0 }
 0x744   : > { %v1644_v54 = vpop.f32.mrb[7].mxu0 }
 0x7ad   : > { %v1151_v55 = vpop.xlane.xlu1 %1150 }
 0x7ae   : > { %v1155_v56 = vsub.f32 %v1142_v36, %v1151_v55 }
 0x7b0   : > { %v1157_v57 = vmul.f32 1.442695, %v1155_v56 }
 0x7b1   : > { %v1154_v58 = vpop.xlane.xlu1 %1153 }
 0x7b2   : > { %1913 = vpow2.f32 %v1157_v57  ;;  %v1156_v59 = vsub.f32 %v1145_v41, %v1154_v58 }
 0x7b4   : > { %v1159_v60 = vmul.f32 1.442695, %v1156_v59 }
 0x7b5   : > { %v911_v61 = vpop.xlane.xlu1 %910 }
 0x7b6   : > { %1915 = vpow2.f32 %v1159_v60 }
 0x7b7   : > { %1917 = vrcp.f32 %v911_v61 }
 0x7b9   : > { %v914_v62 = vpop.xlane.xlu1 %913 }
 0x7ba   : > { %1919 = vrcp.f32 %v914_v62 }
 0x7bb   : > { %1921 = vrcp.f32 %v1040_v0 }
 0x7bc   : > { %v1914_v1 = vpop.eup %1913 }
 0x7bd   : > { %v1037_v2 = vpop.xlane.xlu1 %1036  ;;  %v1161_v3 = vsel %vm719_vm2, %v1914_v1, 0.0 }
 0x7be   : > { %1923 = vrcp.f32 %v1037_v2  ;;  %1162 = vadd.xlane.f32.xlu1 %v1161_v3 }
 0x7c0   : > { %v1916_v4 = vpop.eup %1915 }
 0x7c1   : > { %v1164_v6 = vsel %vm719_vm2, %v1916_v4, 0.0  ;;  %v1167_v7 = vpack.c.bf16 %v1916_v4, %v1914_v1  ;;  %v1918_v8 = vpop.eup %1917 }
 0x7c2   : > { %783 = vadd.xlane.f32.xlu1 %v782_v5  ;;  %1165 = vadd.xlane.f32.xlu0 %v1164_v6  ;;  %v962_v11 = vmul.f32 %v1918_v8, %v953_v49 }
 0x7c3   : > { %1674 = vmatmul.mubr.msk.bf16.vlgmr.msra.gmra.mrb[8].mxu0 %vm719_vm2, %v1167_v7 }
 0x7c4   : > { %v1920_v9 = vpop.eup %1919  ;;  %1693 = vmatprep.mubr.msk.bf16.mxu0 %vm2192_vm1, %v2191_v63  ;;  %1678 = vmatpush3.bf16.msra.mxu0 %v1893_v18 }
 0x7c5   : > { %v963_v12 = vmul.f32 %v1920_v9, %v956_v52  ;;  %v1922_v13 = vpop.eup %1921  ;;  %1679 = vmatprep.subr.bf16.mxu0 %v2191_v63 }
 0x7c6   : > { %786 = vadd.xlane.f32.xlu0 %v785_v10  ;;  %v1089_v15 = vmul.f32 %v1922_v13, %v1082_v34 }
 0x7c7   : > { %v964_v39 = vpack.c.bf16 %v963_v12, %v962_v11 }
 0x7c8   : > { %v1924_v14 = vpop.eup %1923  ;;  %1680 = vmatpush3.bf16.msra.mxu0 %v1894_v19 }
 0x7c9   : > { %v1088_v16 = vmul.f32 %v1924_v14, %v2617_v32  ;;  %1681 = vmatprep.subr.bf16.mxu0 %v2191_v63 }
 0x7cb   : > { %v1090_v17 = vpack.c.bf16 %v1089_v15, %v1088_v16 }
 0x7cc   : > { %1682 = vmatpush3.bf16.msra.mxu0 %v1895_v40 }
 0x7cd   : > { %1683 = vmatprep.subr.bf16.mxu0 %v2191_v63 }
 0x7d0   : > { %1684 = vmatpush3.bf16.msra.mxu0 %v1896_v20 }
 0x7d1   : > { %1685 = vmatprep.subr.bf16.mxu0 %v2191_v63 }
 0x7d3   : > { %1218 = vrot.lane.b32.xlu1 %v964_v39, %s2195_s12  ;;  %s2047_s12 = scalar_lea.vmem %s2660_s18, 256 }
 0x7d4   : > { %1686 = vmatpush3.bf16.msra.mxu0 %v1897_v21  ;;  %p2048_p3 = scmp.ne.s32.totalorder %s2660_s18, %s2047_s12  ;;  %p2055_p0 = scmp.lt.s32.totalorder %s2053_s14, %s2047_s12 }
 0x7d5   : > { %1687 = vmatprep.subr.bf16.mxu0 %v2191_v63 }
 0x7d6   : > { %p2049_p9 = pnand %p2048_p3, %p2784_p7  ;;  %p2056_p5 = por %p2055_p0, %p2054_p11 }
 0x7d8   : > { %1688 = vmatpush3.bf16.msra.mxu0 %v1898_v22  ;;  %p2050_p13 = pneg %p2049_p9 }
 0x7d9   : > { %1689 = vmatprep.subr.bf16.mxu0 %v2191_v63 }
 0x7da   : > { %p2057_p8 = pnand %p2056_p5, %p2050_p13 }
 0x7dc   : > { %1221 = vrot.lane.b32.xlu0 %v1090_v17, %s2194_s15  ;;  %1690 = vmatpush3.bf16.msra.mxu0 %v1899_v23 }
 0x7dd   : > { %1691 = vmatprep.subr.bf16.mxu0 %v2191_v63 }
 0x7e0   : > { %1692 = vmatpush3.bf16.msra.mxu0 %v1900_v24 }
 0x84b   : > { %v1163_v25 = vpop.xlane.xlu1 %1162 }
 0x84f   : > { %v1166_v26 = vpop.xlane.xlu0 %1165  ;;  %v784_v27 = vpop.xlane.xlu1 %783 }
 0x850   : > { %1925 = vrcp.f32 %v784_v27 }
 0x853   : > { %v787_v28 = vpop.xlane.xlu0 %786 }
 0x854   : > { %1927 = vrcp.f32 %v787_v28 }
 0x855   : > { %1929 = vrcp.f32 %v1163_v25 }
 0x856   : > { %1931 = vrcp.f32 %v1166_v26 }
 0x857   : > { %v1222_v44 = vpop.permute.xlu0 %1221 }
 0x85a   : > { %v1926_v29 = vpop.eup %1925 }
 0x85b   : > { %v835_v31 = vmul.f32 %v1926_v29, %v2592_v51  ;;  %v1219_v51 = vpop.permute.xlu1 %1218 }
 0x85e   : > { %v1928_v30 = vpop.eup %1927 }
 0x85f   : > { %v836_v32 = vmul.f32 %v1928_v30, %v2594_v53  ;;  %v1930_v35 = vpop.eup %1929 }
 0x860   : > { %v1932_v63 = vpop.eup %1931 }
 0x861   : > { %v837_v33 = vpack.c.bf16 %v836_v32, %v835_v31 }
 0x863   : > { %v1228_v53 = vsel %vm719_vm2, %v837_v33, %v1219_v51 }
 0x864   : > { %v1231_v45 = vsel %vm1229_vm3, %v1228_v53, %v1222_v44 }
 0x896   : > { %v1205_v34 = vpop.f32.mrb[8].mxu0 }
 0x897   : > { %v1675_v36 = vpop.f32.mrb[9].mxu0  ;;  %v1214_v38 = vmul.f32 %v1930_v35, %v1205_v34 }
 0x898   : > { %v1208_v37 = vpop.f32.mrb[10].mxu0 }
 0x899   : > { %v1215_v41 = vmul.f32 %v1932_v63, %v1208_v37  ;;  %v1676_v42 = vpop.f32.mrb[11].mxu0 }
 0x89b   : > { %v1216_v43 = vpack.c.bf16 %v1215_v41, %v1214_v38 }
 0x89d   : > { %1224 = vrot.lane.b32.xlu1 %v1216_v43, %s2193_s23  ;;  %s2783_s23 = sld [smem:[#allocation26_spill]] }
 0x8a3   : > { %s2658_s15 = scalar_lea.hbm %s2783_s23, %s1547_s8 }
 0x90f   : > { %v1225_v46 = vpop.permute.xlu1 %1224 }
 0x910   : > { %v1234_v47 = vsel %vm1232_vm4, %v1231_v45, %v1225_v46 }
 0x911   : > { %1694 = vmatmul.mubr.bf16.vlgmr.msra.gmra.mrb[12].mxu0 %v1234_v47 }
 0x9e4   : > { %v1341_v49 = vpop.f32.mrb[12].mxu0 }
 0x9e5   : > { %v1342_v50 = vadd.f32 %v1535_v48, %v1341_v49  ;;  %v1695_v52 = vpop.f32.mrb[13].mxu0 }
 0x9e6   : > { %v1344_v54 = vpop.f32.mrb[14].mxu0 }
 0x9e7   : > { %1348 = vst [vmem:[%s2504_s2] sm:$0xff] %v1342_v50  ;;  %v1345_v55 = vadd.f32 %v1535_v48, %v1344_v54  ;;  %v1696_v56 = vpop.f32.mrb[15].mxu0 }
 0x9e9   : > { %1349 = vst [vmem:[%s2504_s2 + $0x8] sm:$0xff] %v1345_v55 }
 0x9ea   : > { %2060 = shalt.err (!%p2057_p8)
}
 0x9eb   : > { %s2061_s5 = scalar_lea.hbm %s2658_s15, 256  ;;  %s2065_s17 = scalar_lea.hbm %s2783_s23, 1024 }
 0x9ec   : > { %p2062_p12 = scmp.ne.s32.totalorder %s2658_s15, %s2061_s5  ;;  %p2066_p10 = scmp.lt.u32.totalorder %s2658_s15, %s2783_s23 }
 0x9ed   : > { %p2067_p1 = scmp.lt.u32.totalorder %s2065_s17, %s2061_s5  ;;  %p2069_p3 = scmp.lt.u32.totalorder %s2061_s5, %s2658_s15 }
 0x9ee   : > { %p2063_p2 = pnand %p2062_p12, %p2784_p7 }
 0x9ef   : > { %p2068_p4 = por %p2067_p1, %p2066_p10 }
 0x9f0   : > { %p2064_p6 = pneg %p2063_p2 }
 0x9f1   : > { %p2070_p9 = por %p2069_p3, %p2068_p4 }
 0x9f3   : > { %p2071_p13 = pnand %p2070_p9, %p2064_p6 }
 0x9f5   : > { %2074 = shalt.err (!%p2071_p13)
}
 0x9f6   : > { %s2197_s8 = smov 128   ;;  %s2198_s6 = smov 8  }
 0x9f7   : > { %1727 = dma.vmem_to_hbm [thread:$0]  (%p2784_p7), %s2660_s18, 256, %s2658_s15, %s2666_s30, %s2197_s8, %s2197_s8, %s2198_s6  }
 0x9f8 PF: > { %s2785_s3 = sld [smem:[#allocation17_spill]]  ;;  %s2786_s12 = sld [smem:[#allocation20_spill]] }
 0x9f9   : > { %p1754_p11 = scmp.ge.s32.totalorder %s2177_s11, 2 }
 0x9fe   : > { %s1381_s21 = sand.u32 1, %s2785_s3   ;;  %p2787_p0 = scmp.ne.s32.totalorder %s2786_s12, 0 }
 0x9ff   : > { %s1382_s19 = scalar_lea.sflag [#allocation6], %s1381_s21 }
 0xa00   : > { %p1744_p5 = pnand %p1754_p11, %p2787_p0 }
 0xa02   : > { %2132 = dma.done.wait (!%p1744_p5), %s1382_s19, 256  }
 0xa03   : > { %2134 = vsyncadd (!%p1744_p5), %s1382_s19, 4294967040  ;;  %s25_s11 = sadd.s32 1, %s2177_s11   ;;  %s2788_s18 = smov %s2431_s24 }
 0xa04   : > { %p22_p8 = scmp.ge.s32.totalorder %s25_s11, 6   ;;  %s2789_s24 = smov %s2141_s25 }
 0xa05   : > { %s2790_s25 = smov %s2145_s26  ;;  %s2791_s26 = smov %s2436_s1 }
 0xa06   : > { %s2792_s27 = smov %s2153_s28  ;;  %s2793_s28 = smov %s2157_s29 }
 0xa07   : > { %s2794_s29 = smov %s2788_s18  ;;  %s2795_s30 = smov %s2169_s9 }
 0xa08   : > { %s2796_s8 = smov %s2173_s10  ;;  %s2797_s9 = smov %s2800_s20 }
 0xa09   : > { %s2798_s10 = smov %s2804_s22  ;;  %24 = sbr.rel (!%p22_p8) target bundleno = 18 (0x12), region = 122 }
 0xa10   :  { %1387 = vsyncpa [#allocation5], 1 }
 0xa11   :  { %1389 = vsyncpa [#allocation5 + $0x1], 1 }
 0xa12   :  { %1390 = vsyncpa [#allocation8], 1 }
 0xa13   :  { %1391 = vsyncpa [#allocation11], 1 }
 0xa14   :  { %1392 = vsyncpa [#allocation6], 1 }
 0xa15   :  { %1394 = vsyncpa [#allocation6 + $0x1], 1 }

</bundles_post_ra>
